<compile_context>
chip_gen: v6e
topology: v6e:2x2x1
jax: 0.10.0
libtpu: 0.0.40
codegen_flags: <defaults>
</compile_context>

<pallas_src>
import functools
import math

import jax
import jax.numpy as jnp
import numpy as np
from jax.experimental import pallas as pl
from jax.experimental.pallas import tpu as pltpu

_LN_EPS = 1e-5


def _round_up(a, m):
    return (a + m - 1) // m * m


def _layernorm(v, g, b, eps=_LN_EPS):
    # nn.LayerNorm semantics, computed in fp32 (matches the fp16-safe LayerNorm).
    mu = jnp.mean(v, axis=-1, keepdims=True)
    var = jnp.mean(jnp.square(v - mu), axis=-1, keepdims=True)
    return (v - mu) * jax.lax.rsqrt(var + eps) * g + b


# ---------------------------------------------------------------------------
# Fused per-layer kernel: LN1 + QKV (once per batch element, VMEM-resident)
# + batched-head attention + out_proj + residual + LN2 + QuickGELU MLP + residual.
# ---------------------------------------------------------------------------
def layer_kernel(x_ref, ln1_g_ref, ln1_b_ref, w_in_t_ref, b_in_ref,
                 w_out_t_ref, b_out_ref, ln2_g_ref, ln2_b_ref,
                 w_fc_t_ref, b_fc_ref, w_proj_t_ref, b_proj_ref,
                 o_ref,
                 q_scr, kT_scr, v_scr, attn_scr,
                 *, heads, head_dim, seq_tile, valid_len, gelu_bf16):
    D = heads * head_dim
    L_pad = q_scr.shape[1]
    t = pl.program_id(1)

    # Phase 1 (once per batch element): LN1 + fused QKV for the whole sequence
    # into head-major bf16 VMEM scratches.  The per-head scatter (and the K
    # transpose) runs once per batch element, not per query tile, and is
    # O(L*D) next to the O(L*D^2) matmuls, so its lane-sparse stores are noise.
    @pl.when(t == 0)
    def _():
        xf = x_ref[0]                                        # (L_pad, D) fp32
        ln1x = _layernorm(xf, ln1_g_ref[0], ln1_b_ref[0])
        # bf16 MXU operands, fp32 accumulation.  1/sqrt(hd) is pre-folded into
        # the Q rows of w_in_t / b_in.
        qkv = jnp.dot(ln1x.astype(jnp.bfloat16), w_in_t_ref[...],
                      preferred_element_type=jnp.float32) + b_in_ref[0]   # (L_pad, 3D)
        for h in range(heads):
            lo = h * head_dim
            hi = lo + head_dim
            q_scr[h] = qkv[:, lo:hi].astype(jnp.bfloat16)                      # (Lp, hd)
            kT_scr[h] = qkv[:, D + lo:D + hi].T.astype(jnp.bfloat16)           # (hd, Lp)
            v_scr[h] = qkv[:, 2 * D + lo:2 * D + hi].astype(jnp.bfloat16)      # (Lp, hd)

    # Phase 2 (every query tile).
    row0 = pl.multiple_of(t * seq_tile, 8)
    x_t = x_ref[0, pl.ds(row0, seq_tile), :]                 # (TL, D) fp32 residual
    q_t = q_scr[:, pl.ds(row0, seq_tile), :]                 # (H, TL, hd) bf16 (pre-scaled)

    # scores: standard-form batched matmul (H, TL, hd) x (H, hd, Lp) -> (H, TL, Lp)
    s = jax.lax.dot_general(q_t, kT_scr[...], (((2,), (1,)), ((0,), (0,))),
                            preferred_element_type=jnp.float32)
    if valid_len < L_pad:                                    # mask padded keys
        key_idx = jax.lax.broadcasted_iota(jnp.int32, (1, 1, L_pad), 2)
        s = jnp.where(key_idx < valid_len, s, -1e30)

    # fp32 softmax; normalization via approximate reciprocal (EUP slot).
    s = s - jnp.max(s, axis=-1, keepdims=True)
    p = jnp.exp(s)
    p = p * pl.reciprocal(jnp.sum(p, axis=-1, keepdims=True), approx=True)

    # weighted sum: (H, TL, Lp) x (H, Lp, hd) -> (H, TL, hd)
    attn = jax.lax.dot_general(p.astype(jnp.bfloat16), v_scr[...],
                               (((2,), (1,)), ((0,), (0,))),
                               preferred_element_type=jnp.float32)

    # Merge heads into a lane-dense bf16 (TL, D) VMEM scratch.
    for h in range(heads):
        attn_scr[:, h * head_dim:(h + 1) * head_dim] = attn[h].astype(jnp.bfloat16)

    proj = jnp.dot(attn_scr[...], w_out_t_ref[...],
                   preferred_element_type=jnp.float32) + b_out_ref[0]
    x1 = x_t + proj

    ln2x = _layernorm(x1, ln2_g_ref[0], ln2_b_ref[0])
    hmid = jnp.dot(ln2x.astype(jnp.bfloat16), w_fc_t_ref[...],
                   preferred_element_type=jnp.float32) + b_fc_ref[0]      # (TL, 4D)
    if gelu_bf16:
        hb = hmid.astype(jnp.bfloat16)
        hact = hb * jax.nn.sigmoid(1.702 * hb)               # QuickGELU, bf16 gate
    else:
        hact = (hmid * jax.nn.sigmoid(1.702 * hmid)).astype(jnp.bfloat16)
    mlp = jnp.dot(hact, w_proj_t_ref[...],
                  preferred_element_type=jnp.float32) + b_proj_ref[0]
    o_ref[0] = x1 + mlp


# ---------------------------------------------------------------------------
# pallas_call wrapper.
# ---------------------------------------------------------------------------
def _const_spec(a):
    nd = a.ndim
    return pl.BlockSpec(a.shape, lambda b, t, _nd=nd: (0,) * _nd)


def _layer_cost(N, L_pad, D, heads):
    m_qkv = 2 * L_pad * D * (3 * D)
    m_attn = 2 * 2 * L_pad * L_pad * D               # scores + p@V
    m_out = 2 * L_pad * D * D
    m_mlp = 2 * 2 * L_pad * D * (4 * D)
    flops = N * (m_qkv + m_attn + m_out + m_mlp)
    transcendentals = N * (heads * L_pad * L_pad + 4 * L_pad * D)
    bytes_accessed = N * 2 * L_pad * D * 4 + 12 * D * D * 2
    return pl.CostEstimate(flops=flops, transcendentals=transcendentals,
                           bytes_accessed=bytes_accessed)


def _run_layer(x, lw, *, heads, head_dim, seq_tile, valid_len, gelu_bf16, vmem_limit):
    N, L_pad, D = x.shape
    T = L_pad // seq_tile
    ws = (lw["ln1_g"], lw["ln1_b"], lw["w_in_t"], lw["b_in"],
          lw["w_out_t"], lw["b_out"], lw["ln2_g"], lw["ln2_b"],
          lw["w_fc_t"], lw["b_fc"], lw["w_proj_t"], lw["b_proj"])
    kernel = functools.partial(layer_kernel, heads=heads, head_dim=head_dim,
                               seq_tile=seq_tile, valid_len=valid_len,
                               gelu_bf16=gelu_bf16)
    return pl.pallas_call(
        kernel,
        out_shape=jax.ShapeDtypeStruct((N, L_pad, D), jnp.float32),
        grid=(N, T),
        in_specs=[pl.BlockSpec((1, L_pad, D), lambda b, t: (b, 0, 0))]
                 + [_const_spec(a) for a in ws],
        out_specs=pl.BlockSpec((1, seq_tile, D), lambda b, t: (b, t, 0)),
        scratch_shapes=[
            pltpu.VMEM((heads, L_pad, head_dim), jnp.bfloat16),   # q (head-major)
            pltpu.VMEM((heads, head_dim, L_pad), jnp.bfloat16),   # K^T
            pltpu.VMEM((heads, L_pad, head_dim), jnp.bfloat16),   # V
            pltpu.VMEM((seq_tile, D), jnp.bfloat16),              # head-merge scratch
        ],
        compiler_params=pltpu.CompilerParams(
            # batch parallel (megacore split), query-tile axis sequential so the
            # QKV scratch written at t == 0 stays resident for every tile of b.
            dimension_semantics=("parallel", "arbitrary"),
            vmem_limit_bytes=vmem_limit),
        cost_estimate=_layer_cost(N, L_pad, D, heads),
    )(x, *ws)


# ---------------------------------------------------------------------------
# Tiling / device helpers.
# ---------------------------------------------------------------------------
def _choose_tiling(L, seq_tile):
    """Pad L only to a multiple of 8 (plus a near-even tile split), not to a
    multiple of seq_tile (avoids ~2x padded work for e.g. L=257, tile=256)."""
    L8 = _round_up(L, 8)
    tile_target = max(8, _round_up(min(seq_tile, L8), 8))
    if L8 <= tile_target:
        return L8, L8                      # single tile
    T = -(-L8 // tile_target)              # number of query tiles
    tile = _round_up(-(-L8 // T), 8)
    return tile * T, tile


def _device_kind():
    try:
        return jax.devices()[0].device_kind.lower()
    except Exception:
        return ""


def _vmem_limit_bytes(kind):
    if "v5" in kind or "v6" in kind:
        return 100 * 1024 * 1024           # 128 MiB physical VMEM
    return 48 * 1024 * 1024                # v7x: 64 MiB physical per TensorCore


def _check_vmem_budget(L_pad, tile, D, heads, limit):
    bf16, f32 = 2, 4
    weights = 12 * D * D * bf16 * 2                        # bf16 weights, double-buffered
    xio = (L_pad * D + tile * D) * f32 * 2                 # x-in + out blocks, double-buffered
    scr = 3 * L_pad * D * bf16 + tile * D * bf16           # q / K^T / V + head-merge scratch
    act = (L_pad * 3 * D * f32                             # qkv fp32 (t == 0)
           + heads * tile * L_pad * (f32 + bf16)           # scores fp32 + probs bf16
           + tile * 4 * D * (f32 + bf16))                  # MLP hidden
    est = weights + xio + scr + act
    assert est < 0.85 * limit, (
        f"per-step VMEM estimate {est / 2**20:.1f} MiB exceeds 85% of the "
        f"{limit / 2**20:.0f} MiB budget; reduce seq_tile")


# ---------------------------------------------------------------------------
# Transformer stack on (N, L, D) activations (== the LND path of PyTorch).
# ---------------------------------------------------------------------------
def transformer_forward_nld(x_nld, prepared_layers, *, heads, seq_tile=512):
    N, L, D = x_nld.shape
    assert D % heads == 0, "width must be divisible by heads"
    head_dim = D // heads
    L_pad, tile = _choose_tiling(L, seq_tile)
    kind = _device_kind()
    vmem_limit = _vmem_limit_bytes(kind)
    gelu_bf16 = "v5" not in kind           # fp32 gate on v5e (no bf16 VPU/EUP)
    _check_vmem_budget(L_pad, tile, D, heads, vmem_limit)

    x = x_nld.astype(jnp.float32)
    if L_pad != L:
        x = jnp.pad(x, ((0, 0), (0, L_pad - L), (0, 0)))
    for lw in prepared_layers:
        x = _run_layer(x, lw, heads=heads, head_dim=head_dim, seq_tile=tile,
                       valid_len=L, gelu_bf16=gelu_bf16, vmem_limit=vmem_limit)
    return x[:, :L, :]


# ---------------------------------------------------------------------------
# One-time weight preparation (hoisted out of the forward path).
# ---------------------------------------------------------------------------
def prepare_layer_weights(p, heads):
    """Fold SSF scale/shift into the attention params (single-forward-pass
    semantics of the in-place .data mutation), fold the 1/sqrt(head_dim) query
    scaling into the Q rows, pre-transpose, cast matrices to bf16."""
    f32, bf16 = jnp.float32, jnp.bfloat16
    D = p["out_proj_weight"].shape[0]
    head_dim = D // heads
    w_in = p["ssf_scale_1"][:, None] * p["in_proj_weight"] + p["ssf_shift_1"][:, None]
    b_in = p["in_proj_bias"] * p["ssf_scale_2"] + p["ssf_shift_2"]
    q_scale = jnp.concatenate([jnp.full((D,), 1.0 / math.sqrt(head_dim), f32),
                               jnp.ones((2 * D,), f32)])
    w_in = w_in * q_scale[:, None]
    b_in = b_in * q_scale
    w_out = p["ssf_scale_3"][:, None] * p["out_proj_weight"] + p["ssf_shift_3"][:, None]
    b_out = p["out_proj_bias"] * p["ssf_scale_4"] + p["ssf_shift_4"]
    return dict(
        ln1_g=p["ln1_g"].astype(f32)[None, :], ln1_b=p["ln1_b"].astype(f32)[None, :],
        w_in_t=w_in.T.astype(bf16), b_in=b_in.astype(f32)[None, :],
        w_out_t=w_out.T.astype(bf16), b_out=b_out.astype(f32)[None, :],
        ln2_g=p["ln2_g"].astype(f32)[None, :], ln2_b=p["ln2_b"].astype(f32)[None, :],
        w_fc_t=p["c_fc_weight"].T.astype(bf16), b_fc=p["c_fc_bias"].astype(f32)[None, :],
        w_proj_t=p["c_proj_weight"].T.astype(bf16), b_proj=p["c_proj_bias"].astype(f32)[None, :],
    )


# ---------------------------------------------------------------------------
# VisionTransformer3D glue (patch embed + head run as plain XLA ops).
# ---------------------------------------------------------------------------
def _patch_embed(x, params, patch_size):
    """Conv3d(kernel=stride=patch, bias=False) + cls token + pos emb + ln_pre."""
    N, C, Dd, H, W = x.shape
    p = patch_size
    width = params["conv_w"].shape[0]
    xp = x.reshape(N, C, Dd // p, p, H // p, p, W // p, p)
    xp = xp.transpose(0, 2, 4, 6, 1, 3, 5, 7).reshape(N, -1, C * p ** 3)
    w = params["conv_w"].reshape(width, -1)
    tokens = jnp.einsum("npf,of->npo", xp.astype(jnp.float32), w.astype(jnp.float32))
    cls = jnp.broadcast_to(params["class_embedding"].astype(jnp.float32), (N, 1, width))
    feats = jnp.concatenate([cls, tokens], axis=1)
    feats = feats + params["positional_embedding"].astype(jnp.float32)[None]
    return _layernorm(feats, params["ln_pre_g"], params["ln_pre_b"])


def _head(y_nld, params):
    tok0 = _layernorm(y_nld[:, 0, :], params["ln_post_g"], params["ln_post_b"])
    return tok0 @ params["proj"]


def vit3d_forward(x, params, prepared_layers, *, heads, patch_size, seq_tile=512):
    feats = _patch_embed(x, params, patch_size)               # (N, L, width)
    y = transformer_forward_nld(feats, prepared_layers, heads=heads, seq_tile=seq_tile)
    return _head(y, params)


# ---------------------------------------------------------------------------
# Deterministic parameter init (shapes follow the module __init__).
# ---------------------------------------------------------------------------
def init_vit3d_params(key, *, in_chans, depth_chans, input_resolution, patch_size,
                      width, layers, heads, output_dim):
    assert width % heads == 0
    D = width
    n_tokens = (input_resolution // patch_size) ** 2 * (depth_chans // patch_size) + 1
    scale = width ** -0.5
    keys = jax.random.split(key, 4 + layers)
    params = {
        "conv_w": 0.02 * jax.random.normal(
            keys[0], (width, in_chans, patch_size, patch_size, patch_size), jnp.float32),
        "class_embedding": scale * jax.random.normal(keys[1], (width,), jnp.float32),
        "positional_embedding": scale * jax.random.normal(keys[2], (n_tokens, width), jnp.float32),
        "ln_pre_g": jnp.ones((width,), jnp.float32),
        "ln_pre_b": jnp.zeros((width,), jnp.float32),
        "ln_post_g": jnp.ones((width,), jnp.float32),
        "ln_post_b": jnp.zeros((width,), jnp.float32),
        "proj": scale * jax.random.normal(keys[3], (width, output_dim), jnp.float32),
    }
    layer_params = []
    for i in range(layers):
        k = jax.random.split(keys[4 + i], 16)
        layer_params.append({
            "in_proj_weight": 0.02 * jax.random.normal(k[0], (3 * D, D), jnp.float32),
            "in_proj_bias":   0.02 * jax.random.normal(k[1], (3 * D,), jnp.float32),
            "out_proj_weight": 0.02 * jax.random.normal(k[2], (D, D), jnp.float32),
            "out_proj_bias":   0.02 * jax.random.normal(k[3], (D,), jnp.float32),
            "ln1_g": jnp.ones((D,), jnp.float32), "ln1_b": jnp.zeros((D,), jnp.float32),
            "ln2_g": jnp.ones((D,), jnp.float32), "ln2_b": jnp.zeros((D,), jnp.float32),
            "c_fc_weight":   0.02 * jax.random.normal(k[4], (4 * D, D), jnp.float32),
            "c_fc_bias":     0.02 * jax.random.normal(k[5], (4 * D,), jnp.float32),
            "c_proj_weight": 0.02 * jax.random.normal(k[6], (D, 4 * D), jnp.float32),
            "c_proj_bias":   0.02 * jax.random.normal(k[7], (D,), jnp.float32),
            # init_ssf_scale_shift: scale ~ N(1, 0.02), shift ~ N(0, 0.02)
            "ssf_scale_1": 1.0 + 0.02 * jax.random.normal(k[8], (3 * D,), jnp.float32),
            "ssf_shift_1": 0.02 * jax.random.normal(k[9], (3 * D,), jnp.float32),
            "ssf_scale_2": 1.0 + 0.02 * jax.random.normal(k[10], (3 * D,), jnp.float32),
            "ssf_shift_2": 0.02 * jax.random.normal(k[11], (3 * D,), jnp.float32),
            "ssf_scale_3": 1.0 + 0.02 * jax.random.normal(k[12], (D,), jnp.float32),
            "ssf_shift_3": 0.02 * jax.random.normal(k[13], (D,), jnp.float32),
            "ssf_scale_4": 1.0 + 0.02 * jax.random.normal(k[14], (D,), jnp.float32),
            "ssf_shift_4": 0.02 * jax.random.normal(k[15], (D,), jnp.float32),
        })
    params["layers"] = layer_params
    return params


# ---------------------------------------------------------------------------
# Pure-JAX fp32 reference (transformer stack re-implemented; glue is shared).
# ---------------------------------------------------------------------------
def reference_transformer_nld(x, layer_params, heads):
    prec = jax.lax.Precision.HIGHEST
    N, L, D = x.shape
    hd = D // heads
    x = x.astype(jnp.float32)
    for p in layer_params:
        w_in = p["ssf_scale_1"][:, None] * p["in_proj_weight"] + p["ssf_shift_1"][:, None]
        b_in = p["in_proj_bias"] * p["ssf_scale_2"] + p["ssf_shift_2"]
        w_out = p["ssf_scale_3"][:, None] * p["out_proj_weight"] + p["ssf_shift_3"][:, None]
        b_out = p["out_proj_bias"] * p["ssf_scale_4"] + p["ssf_shift_4"]
        ln1x = _layernorm(x, p["ln1_g"], p["ln1_b"])
        qkv = jnp.einsum("nld,ed->nle", ln1x, w_in, precision=prec) + b_in
        q, k, v = qkv[..., :D], qkv[..., D:2 * D], qkv[..., 2 * D:]
        q = q.reshape(N, L, heads, hd).transpose(0, 2, 1, 3) / math.sqrt(hd)
        k = k.reshape(N, L, heads, hd).transpose(0, 2, 1, 3)
        v = v.reshape(N, L, heads, hd).transpose(0, 2, 1, 3)
        s = jnp.einsum("nhqd,nhkd->nhqk", q, k, precision=prec)
        w = jax.nn.softmax(s, axis=-1)
        a = jnp.einsum("nhqk,nhkd->nhqd", w, v, precision=prec)
        a = a.transpose(0, 2, 1, 3).reshape(N, L, D)
        x = x + jnp.einsum("nld,ed->nle", a, w_out, precision=prec) + b_out
        ln2x = _layernorm(x, p["ln2_g"], p["ln2_b"])
        hmid = jnp.einsum("nld,ed->nle", ln2x, p["c_fc_weight"], precision=prec) + p["c_fc_bias"]
        hmid = hmid * jax.nn.sigmoid(1.702 * hmid)
        x = x + jnp.einsum("nle,de->nld", hmid, p["c_proj_weight"], precision=prec) + p["c_proj_bias"]
    return x


def reference_vit3d_forward(x, params, *, heads, patch_size):
    feats = _patch_embed(x, params, patch_size)
    y = reference_transformer_nld(feats, params["layers"], heads)
    return _head(y, params)


if __name__ == "__main__":
    # Small 3D-ViT config: (16/4)^2 * (16/4) = 64 patches + 1 cls token -> L = 65.
    IN_CHANS, DEPTH, RES, PATCH = 4, 16, 16, 4
    WIDTH, LAYERS, HEADS, OUT_DIM = 64, 2, 4, 32
    N = 2
    SEQ_TILE = 32   # small on purpose: L=65 -> L_pad=72, 3 query tiles of 24 (exercises
                    # the multi-tile grid, the t==0 QKV phase and the padding mask)

    key = jax.random.PRNGKey(0)
    kx, kp = jax.random.split(key)
    x = jax.random.normal(kx, (N, IN_CHANS, DEPTH, RES, RES), jnp.float32)
    params = init_vit3d_params(kp, in_chans=IN_CHANS, depth_chans=DEPTH,
                               input_resolution=RES, patch_size=PATCH, width=WIDTH,
                               layers=LAYERS, heads=HEADS, output_dim=OUT_DIM)
    # One-time weight preparation (SSF fold + q-scale fold + transpose + bf16 cast).
    prepared = [prepare_layer_weights(p, HEADS) for p in params["layers"]]

    fwd = jax.jit(functools.partial(vit3d_forward, heads=HEADS,
                                    patch_size=PATCH, seq_tile=SEQ_TILE))
    out = jax.block_until_ready(fwd(x, params, prepared))

    ref = reference_vit3d_forward(x, params, heads=HEADS, patch_size=PATCH)
    assert out.shape == (N, OUT_DIM)
    assert bool(jnp.all(jnp.isfinite(out)))
    np.testing.assert_allclose(np.asarray(out), np.asarray(ref), atol=2e-2, rtol=2e-2)

    print("KERNEL_OK")
</pallas_src>

<mosaic_0001>
module attributes {stable_mosaic.version = 11 : i64} {
  func.func @layer_kernel(%arg0: i32, %arg1: i32, %arg2: memref<1x72x64xf32, #tpu.memory_space<vmem>>, %arg3: memref<1x64xf32, #tpu.memory_space<vmem>>, %arg4: memref<1x64xf32, #tpu.memory_space<vmem>>, %arg5: memref<64x192xbf16, #tpu.memory_space<vmem>>, %arg6: memref<1x192xf32, #tpu.memory_space<vmem>>, %arg7: memref<64x64xbf16, #tpu.memory_space<vmem>>, %arg8: memref<1x64xf32, #tpu.memory_space<vmem>>, %arg9: memref<1x64xf32, #tpu.memory_space<vmem>>, %arg10: memref<1x64xf32, #tpu.memory_space<vmem>>, %arg11: memref<64x256xbf16, #tpu.memory_space<vmem>>, %arg12: memref<1x256xf32, #tpu.memory_space<vmem>>, %arg13: memref<256x64xbf16, #tpu.memory_space<vmem>>, %arg14: memref<1x64xf32, #tpu.memory_space<vmem>>, %arg15: memref<1x24x64xf32, #tpu.memory_space<vmem>>, %arg16: memref<4x72x16xbf16, #tpu.memory_space<vmem>>, %arg17: memref<4x16x72xbf16, #tpu.memory_space<vmem>>, %arg18: memref<4x72x16xbf16, #tpu.memory_space<vmem>>, %arg19: memref<24x64xbf16, #tpu.memory_space<vmem>>) attributes {dimension_semantics = [#tpu.dimension_semantics<parallel>, #tpu.dimension_semantics<arbitrary>], iteration_bounds = array<i64: 2, 3>, scalar_prefetch = 0 : i64, scratch_operands = 4 : i64, tpu.core_type = #tpu.core_type<tc>, window_params = [{transform_indices = @transform_0, window_bounds = array<i64: 1, 72, 64>}, {pipeline_mode = #tpu.pipeline_mode<synchronous>, transform_indices = @transform_1, window_bounds = array<i64: 1, 64>}, {pipeline_mode = #tpu.pipeline_mode<synchronous>, transform_indices = @transform_2, window_bounds = array<i64: 1, 64>}, {pipeline_mode = #tpu.pipeline_mode<synchronous>, transform_indices = @transform_3, window_bounds = array<i64: 64, 192>}, {pipeline_mode = #tpu.pipeline_mode<synchronous>, transform_indices = @transform_4, window_bounds = array<i64: 1, 192>}, {pipeline_mode = #tpu.pipeline_mode<synchronous>, transform_indices = @transform_5, window_bounds = array<i64: 64, 64>}, {pipeline_mode = #tpu.pipeline_mode<synchronous>, transform_indices = @transform_6, window_bounds = array<i64: 1, 64>}, {pipeline_mode = #tpu.pipeline_mode<synchronous>, transform_indices = @transform_7, window_bounds = array<i64: 1, 64>}, {pipeline_mode = #tpu.pipeline_mode<synchronous>, transform_indices = @transform_8, window_bounds = array<i64: 1, 64>}, {pipeline_mode = #tpu.pipeline_mode<synchronous>, transform_indices = @transform_9, window_bounds = array<i64: 64, 256>}, {pipeline_mode = #tpu.pipeline_mode<synchronous>, transform_indices = @transform_10, window_bounds = array<i64: 1, 256>}, {pipeline_mode = #tpu.pipeline_mode<synchronous>, transform_indices = @transform_11, window_bounds = array<i64: 256, 64>}, {pipeline_mode = #tpu.pipeline_mode<synchronous>, transform_indices = @transform_12, window_bounds = array<i64: 1, 64>}, {transform_indices = @transform_13, window_bounds = array<i64: 1, 24, 64>}]} {
    %c0_i32 = arith.constant 0 : i32
    %0 = arith.cmpi eq, %arg1, %c0_i32 : i32
    %1 = arith.extui %0 : i1 to i32
    %c0_i32_0 = arith.constant 0 : i32
    %2 = arith.cmpi ne, %1, %c0_i32_0 : i32
    scf.if %2 {
      %c0_50 = arith.constant 0 : index
      %c0_51 = arith.constant 0 : index
      %c0_52 = arith.constant 0 : index
      %113 = vector.load %arg2[%c0_50, %c0_51, %c0_52] : memref<1x72x64xf32, #tpu.memory_space<vmem>>, vector<1x72x64xf32>
      %114 = vector.shape_cast %113 : vector<1x72x64xf32> to vector<72x64xf32>
      %c0_53 = arith.constant 0 : index
      %c0_54 = arith.constant 0 : index
      %115 = vector.load %arg3[%c0_53, %c0_54] : memref<1x64xf32, #tpu.memory_space<vmem>>, vector<1x64xf32>
      %116 = vector.shape_cast %115 : vector<1x64xf32> to vector<64xf32>
      %c0_55 = arith.constant 0 : index
      %c0_56 = arith.constant 0 : index
      %117 = vector.load %arg4[%c0_55, %c0_56] : memref<1x64xf32, #tpu.memory_space<vmem>>, vector<1x64xf32>
      %118 = vector.shape_cast %117 : vector<1x64xf32> to vector<64xf32>
      %cst_57 = arith.constant dense<0.000000e+00> : vector<72xf32>
      %119 = vector.multi_reduction <add>, %114, %cst_57 [1] : vector<72x64xf32> to vector<72xf32>
      %120 = vector.shape_cast %119 : vector<72xf32> to vector<72x1xf32>
      %cst_58 = arith.constant 6.400000e+01 : f32
      %121 = vector.broadcast %cst_58 : f32 to vector<72x1xf32>
      %122 = arith.divf %120, %121 : vector<72x1xf32>
      %123 = vector.broadcast %122 : vector<72x1xf32> to vector<72x64xf32>
      %124 = arith.subf %114, %123 : vector<72x64xf32>
      %125 = arith.mulf %124, %124 : vector<72x64xf32>
      %cst_59 = arith.constant dense<0.000000e+00> : vector<72xf32>
      %126 = vector.multi_reduction <add>, %125, %cst_59 [1] : vector<72x64xf32> to vector<72xf32>
      %127 = vector.shape_cast %126 : vector<72xf32> to vector<72x1xf32>
      %cst_60 = arith.constant 6.400000e+01 : f32
      %128 = vector.broadcast %cst_60 : f32 to vector<72x1xf32>
      %129 = arith.divf %127, %128 : vector<72x1xf32>
      %130 = vector.broadcast %122 : vector<72x1xf32> to vector<72x64xf32>
      %131 = arith.subf %114, %130 : vector<72x64xf32>
      %cst_61 = arith.constant 9.99999974E-6 : f32
      %132 = vector.broadcast %cst_61 : f32 to vector<72x1xf32>
      %133 = arith.addf %129, %132 : vector<72x1xf32>
      %134 = math.rsqrt %133 : vector<72x1xf32>
      %135 = vector.broadcast %134 : vector<72x1xf32> to vector<72x64xf32>
      %136 = arith.mulf %131, %135 : vector<72x64xf32>
      %137 = vector.shape_cast %116 : vector<64xf32> to vector<1x64xf32>
      %138 = vector.broadcast %137 : vector<1x64xf32> to vector<72x64xf32>
      %139 = arith.mulf %136, %138 : vector<72x64xf32>
      %140 = vector.shape_cast %118 : vector<64xf32> to vector<1x64xf32>
      %141 = vector.broadcast %140 : vector<1x64xf32> to vector<72x64xf32>
      %142 = arith.addf %139, %141 : vector<72x64xf32>
      %143 = arith.truncf %142 : vector<72x64xf32> to vector<72x64xbf16>
      %c0_62 = arith.constant 0 : index
      %c0_63 = arith.constant 0 : index
      %144 = vector.load %arg5[%c0_62, %c0_63] : memref<64x192xbf16, #tpu.memory_space<vmem>>, vector<64x192xbf16>
      %cst_64 = arith.constant dense<0.000000e+00> : vector<72x192xf32>
      %145 = tpu.matmul %143, %144, %cst_64 {dimension_numbers = #tpu.dot_dimension_numbers<[1], [0], [0], [1], [0, 0, 1, 1], [], []>} : vector<72x64xbf16>, vector<64x192xbf16>, vector<72x192xf32> -> vector<72x192xf32>
      %c0_65 = arith.constant 0 : index
      %c0_66 = arith.constant 0 : index
      %146 = vector.load %arg6[%c0_65, %c0_66] : memref<1x192xf32, #tpu.memory_space<vmem>>, vector<1x192xf32>
      %147 = vector.shape_cast %146 : vector<1x192xf32> to vector<192xf32>
      %148 = vector.shape_cast %147 : vector<192xf32> to vector<1x192xf32>
      %149 = vector.broadcast %148 : vector<1x192xf32> to vector<72x192xf32>
      %150 = arith.addf %145, %149 : vector<72x192xf32>
      %151 = vector.extract_strided_slice %150 {offsets = [0, 0], sizes = [72, 16], strides = [1, 1]} : vector<72x192xf32> to vector<72x16xf32>
      %152 = arith.truncf %151 : vector<72x16xf32> to vector<72x16xbf16>
      %c0_67 = arith.constant 0 : index
      %c0_68 = arith.constant 0 : index
      %c0_69 = arith.constant 0 : index
      %153 = vector.load %arg16[%c0_67, %c0_68, %c0_69] : memref<4x72x16xbf16, #tpu.memory_space<vmem>>, vector<1x72x16xbf16>
      %154 = vector.shape_cast %153 : vector<1x72x16xbf16> to vector<72x16xbf16>
      %155 = vector.shape_cast %152 : vector<72x16xbf16> to vector<1x72x16xbf16>
      tpu.vector_store %arg16[%c0_67, %c0_68, %c0_69], %155 {strides = array<i32>} : memref<4x72x16xbf16, #tpu.memory_space<vmem>>, vector<1x72x16xbf16>,
      %156 = vector.extract_strided_slice %150 {offsets = [0, 64], sizes = [72, 16], strides = [1, 1]} : vector<72x192xf32> to vector<72x16xf32>
      %157 = tpu.transpose %156, [1, 0] : vector<72x16xf32> -> vector<16x72xf32>
      %158 = arith.truncf %157 : vector<16x72xf32> to vector<16x72xbf16>
      %c0_70 = arith.constant 0 : index
      %c0_71 = arith.constant 0 : index
      %c0_72 = arith.constant 0 : index
      %159 = vector.load %arg17[%c0_70, %c0_71, %c0_72] : memref<4x16x72xbf16, #tpu.memory_space<vmem>>, vector<1x16x72xbf16>
      %160 = vector.shape_cast %159 : vector<1x16x72xbf16> to vector<16x72xbf16>
      %161 = vector.shape_cast %158 : vector<16x72xbf16> to vector<1x16x72xbf16>
      tpu.vector_store %arg17[%c0_70, %c0_71, %c0_72], %161 {strides = array<i32>} : memref<4x16x72xbf16, #tpu.memory_space<vmem>>, vector<1x16x72xbf16>,
      %162 = vector.extract_strided_slice %150 {offsets = [0, 128], sizes = [72, 16], strides = [1, 1]} : vector<72x192xf32> to vector<72x16xf32>
      %163 = arith.truncf %162 : vector<72x16xf32> to vector<72x16xbf16>
      %c0_73 = arith.constant 0 : index
      %c0_74 = arith.constant 0 : index
      %c0_75 = arith.constant 0 : index
      %164 = vector.load %arg18[%c0_73, %c0_74, %c0_75] : memref<4x72x16xbf16, #tpu.memory_space<vmem>>, vector<1x72x16xbf16>
      %165 = vector.shape_cast %164 : vector<1x72x16xbf16> to vector<72x16xbf16>
      %166 = vector.shape_cast %163 : vector<72x16xbf16> to vector<1x72x16xbf16>
      tpu.vector_store %arg18[%c0_73, %c0_74, %c0_75], %166 {strides = array<i32>} : memref<4x72x16xbf16, #tpu.memory_space<vmem>>, vector<1x72x16xbf16>,
      %167 = vector.extract_strided_slice %150 {offsets = [0, 16], sizes = [72, 16], strides = [1, 1]} : vector<72x192xf32> to vector<72x16xf32>
      %168 = arith.truncf %167 : vector<72x16xf32> to vector<72x16xbf16>
      %c1 = arith.constant 1 : index
      %c0_76 = arith.constant 0 : index
      %c0_77 = arith.constant 0 : index
      %169 = vector.load %arg16[%c1, %c0_76, %c0_77] : memref<4x72x16xbf16, #tpu.memory_space<vmem>>, vector<1x72x16xbf16>
      %170 = vector.shape_cast %169 : vector<1x72x16xbf16> to vector<72x16xbf16>
      %171 = vector.shape_cast %168 : vector<72x16xbf16> to vector<1x72x16xbf16>
      tpu.vector_store %arg16[%c1, %c0_76, %c0_77], %171 {strides = array<i32>} : memref<4x72x16xbf16, #tpu.memory_space<vmem>>, vector<1x72x16xbf16>,
      %172 = vector.extract_strided_slice %150 {offsets = [0, 80], sizes = [72, 16], strides = [1, 1]} : vector<72x192xf32> to vector<72x16xf32>
      %173 = tpu.transpose %172, [1, 0] : vector<72x16xf32> -> vector<16x72xf32>
      %174 = arith.truncf %173 : vector<16x72xf32> to vector<16x72xbf16>
      %c1_78 = arith.constant 1 : index
      %c0_79 = arith.constant 0 : index
      %c0_80 = arith.constant 0 : index
      %175 = vector.load %arg17[%c1_78, %c0_79, %c0_80] : memref<4x16x72xbf16, #tpu.memory_space<vmem>>, vector<1x16x72xbf16>
      %176 = vector.shape_cast %175 : vector<1x16x72xbf16> to vector<16x72xbf16>
      %177 = vector.shape_cast %174 : vector<16x72xbf16> to vector<1x16x72xbf16>
      tpu.vector_store %arg17[%c1_78, %c0_79, %c0_80], %177 {strides = array<i32>} : memref<4x16x72xbf16, #tpu.memory_space<vmem>>, vector<1x16x72xbf16>,
      %178 = vector.extract_strided_slice %150 {offsets = [0, 144], sizes = [72, 16], strides = [1, 1]} : vector<72x192xf32> to vector<72x16xf32>
      %179 = arith.truncf %178 : vector<72x16xf32> to vector<72x16xbf16>
      %c1_81 = arith.constant 1 : index
      %c0_82 = arith.constant 0 : index
      %c0_83 = arith.constant 0 : index
      %180 = vector.load %arg18[%c1_81, %c0_82, %c0_83] : memref<4x72x16xbf16, #tpu.memory_space<vmem>>, vector<1x72x16xbf16>
      %181 = vector.shape_cast %180 : vector<1x72x16xbf16> to vector<72x16xbf16>
      %182 = vector.shape_cast %179 : vector<72x16xbf16> to vector<1x72x16xbf16>
      tpu.vector_store %arg18[%c1_81, %c0_82, %c0_83], %182 {strides = array<i32>} : memref<4x72x16xbf16, #tpu.memory_space<vmem>>, vector<1x72x16xbf16>,
      %183 = vector.extract_strided_slice %150 {offsets = [0, 32], sizes = [72, 16], strides = [1, 1]} : vector<72x192xf32> to vector<72x16xf32>
      %184 = arith.truncf %183 : vector<72x16xf32> to vector<72x16xbf16>
      %c2 = arith.constant 2 : index
      %c0_84 = arith.constant 0 : index
      %c0_85 = arith.constant 0 : index
      %185 = vector.load %arg16[%c2, %c0_84, %c0_85] : memref<4x72x16xbf16, #tpu.memory_space<vmem>>, vector<1x72x16xbf16>
      %186 = vector.shape_cast %185 : vector<1x72x16xbf16> to vector<72x16xbf16>
      %187 = vector.shape_cast %184 : vector<72x16xbf16> to vector<1x72x16xbf16>
      tpu.vector_store %arg16[%c2, %c0_84, %c0_85], %187 {strides = array<i32>} : memref<4x72x16xbf16, #tpu.memory_space<vmem>>, vector<1x72x16xbf16>,
      %188 = vector.extract_strided_slice %150 {offsets = [0, 96], sizes = [72, 16], strides = [1, 1]} : vector<72x192xf32> to vector<72x16xf32>
      %189 = tpu.transpose %188, [1, 0] : vector<72x16xf32> -> vector<16x72xf32>
      %190 = arith.truncf %189 : vector<16x72xf32> to vector<16x72xbf16>
      %c2_86 = arith.constant 2 : index
      %c0_87 = arith.constant 0 : index
      %c0_88 = arith.constant 0 : index
      %191 = vector.load %arg17[%c2_86, %c0_87, %c0_88] : memref<4x16x72xbf16, #tpu.memory_space<vmem>>, vector<1x16x72xbf16>
      %192 = vector.shape_cast %191 : vector<1x16x72xbf16> to vector<16x72xbf16>
      %193 = vector.shape_cast %190 : vector<16x72xbf16> to vector<1x16x72xbf16>
      tpu.vector_store %arg17[%c2_86, %c0_87, %c0_88], %193 {strides = array<i32>} : memref<4x16x72xbf16, #tpu.memory_space<vmem>>, vector<1x16x72xbf16>,
      %194 = vector.extract_strided_slice %150 {offsets = [0, 160], sizes = [72, 16], strides = [1, 1]} : vector<72x192xf32> to vector<72x16xf32>
      %195 = arith.truncf %194 : vector<72x16xf32> to vector<72x16xbf16>
      %c2_89 = arith.constant 2 : index
      %c0_90 = arith.constant 0 : index
      %c0_91 = arith.constant 0 : index
      %196 = vector.load %arg18[%c2_89, %c0_90, %c0_91] : memref<4x72x16xbf16, #tpu.memory_space<vmem>>, vector<1x72x16xbf16>
      %197 = vector.shape_cast %196 : vector<1x72x16xbf16> to vector<72x16xbf16>
      %198 = vector.shape_cast %195 : vector<72x16xbf16> to vector<1x72x16xbf16>
      tpu.vector_store %arg18[%c2_89, %c0_90, %c0_91], %198 {strides = array<i32>} : memref<4x72x16xbf16, #tpu.memory_space<vmem>>, vector<1x72x16xbf16>,
      %199 = vector.extract_strided_slice %150 {offsets = [0, 48], sizes = [72, 16], strides = [1, 1]} : vector<72x192xf32> to vector<72x16xf32>
      %200 = arith.truncf %199 : vector<72x16xf32> to vector<72x16xbf16>
      %c3 = arith.constant 3 : index
      %c0_92 = arith.constant 0 : index
      %c0_93 = arith.constant 0 : index
      %201 = vector.load %arg16[%c3, %c0_92, %c0_93] : memref<4x72x16xbf16, #tpu.memory_space<vmem>>, vector<1x72x16xbf16>
      %202 = vector.shape_cast %201 : vector<1x72x16xbf16> to vector<72x16xbf16>
      %203 = vector.shape_cast %200 : vector<72x16xbf16> to vector<1x72x16xbf16>
      tpu.vector_store %arg16[%c3, %c0_92, %c0_93], %203 {strides = array<i32>} : memref<4x72x16xbf16, #tpu.memory_space<vmem>>, vector<1x72x16xbf16>,
      %204 = vector.extract_strided_slice %150 {offsets = [0, 112], sizes = [72, 16], strides = [1, 1]} : vector<72x192xf32> to vector<72x16xf32>
      %205 = tpu.transpose %204, [1, 0] : vector<72x16xf32> -> vector<16x72xf32>
      %206 = arith.truncf %205 : vector<16x72xf32> to vector<16x72xbf16>
      %c3_94 = arith.constant 3 : index
      %c0_95 = arith.constant 0 : index
      %c0_96 = arith.constant 0 : index
      %207 = vector.load %arg17[%c3_94, %c0_95, %c0_96] : memref<4x16x72xbf16, #tpu.memory_space<vmem>>, vector<1x16x72xbf16>
      %208 = vector.shape_cast %207 : vector<1x16x72xbf16> to vector<16x72xbf16>
      %209 = vector.shape_cast %206 : vector<16x72xbf16> to vector<1x16x72xbf16>
      tpu.vector_store %arg17[%c3_94, %c0_95, %c0_96], %209 {strides = array<i32>} : memref<4x16x72xbf16, #tpu.memory_space<vmem>>, vector<1x16x72xbf16>,
      %210 = vector.extract_strided_slice %150 {offsets = [0, 176], sizes = [72, 16], strides = [1, 1]} : vector<72x192xf32> to vector<72x16xf32>
      %211 = arith.truncf %210 : vector<72x16xf32> to vector<72x16xbf16>
      %c3_97 = arith.constant 3 : index
      %c0_98 = arith.constant 0 : index
      %c0_99 = arith.constant 0 : index
      %212 = vector.load %arg18[%c3_97, %c0_98, %c0_99] : memref<4x72x16xbf16, #tpu.memory_space<vmem>>, vector<1x72x16xbf16>
      %213 = vector.shape_cast %212 : vector<1x72x16xbf16> to vector<72x16xbf16>
      %214 = vector.shape_cast %211 : vector<72x16xbf16> to vector<1x72x16xbf16>
      tpu.vector_store %arg18[%c3_97, %c0_98, %c0_99], %214 {strides = array<i32>} : memref<4x72x16xbf16, #tpu.memory_space<vmem>>, vector<1x72x16xbf16>,
    } else {
    }
    %c24_i32 = arith.constant 24 : i32
    %3 = arith.muli %arg1, %c24_i32 : i32
    %4 = tpu.assume_multiple %3, 8 : i32
    %c0 = arith.constant 0 : index
    %5 = arith.index_cast %4 : i32 to index
    %c0_1 = arith.constant 0 : index
    %6 = vector.load %arg2[%c0, %5, %c0_1] : memref<1x72x64xf32, #tpu.memory_space<vmem>>, vector<1x24x64xf32>
    %7 = vector.shape_cast %6 : vector<1x24x64xf32> to vector<24x64xf32>
    %c0_2 = arith.constant 0 : index
    %8 = arith.index_cast %4 : i32 to index
    %c0_3 = arith.constant 0 : index
    %9 = vector.load %arg16[%c0_2, %8, %c0_3] : memref<4x72x16xbf16, #tpu.memory_space<vmem>>, vector<4x24x16xbf16>
    %c0_4 = arith.constant 0 : index
    %c0_5 = arith.constant 0 : index
    %c0_6 = arith.constant 0 : index
    %10 = vector.load %arg17[%c0_4, %c0_5, %c0_6] : memref<4x16x72xbf16, #tpu.memory_space<vmem>>, vector<4x16x72xbf16>
    %cst = arith.constant dense<0.000000e+00> : vector<4x24x72xf32>
    %11 = tpu.matmul %9, %10, %cst {dimension_numbers = #tpu.dot_dimension_numbers<[2], [1], [1], [2], [0, 0, 0, 1, 1, 2], [0], [0]>} : vector<4x24x16xbf16>, vector<4x16x72xbf16>, vector<4x24x72xf32> -> vector<4x24x72xf32>
    %12 = tpu.iota {dimensions = array<i32: 2>} : vector<1x1x72xi32>
    %c65_i32 = arith.constant 65 : i32
    %13 = vector.broadcast %c65_i32 : i32 to vector<1x1x72xi32>
    %14 = arith.cmpi slt, %12, %13 : vector<1x1x72xi32>
    %cst_7 = arith.constant -1.000000e+30 : f32
    %15 = vector.shape_cast %14 : vector<1x1x72xi1> to vector<1x1x72xi1>
    %16 = vector.broadcast %15 : vector<1x1x72xi1> to vector<4x24x72xi1>
    %17 = vector.broadcast %cst_7 : f32 to vector<4x24x72xf32>
    %18 = arith.select %16, %11, %17 : vector<4x24x72xi1>, vector<4x24x72xf32>
    %cst_8 = arith.constant dense<0xFF800000> : vector<4x24xf32>
    %19 = vector.multi_reduction <maximumf>, %18, %cst_8 [2] : vector<4x24x72xf32> to vector<4x24xf32>
    %20 = vector.shape_cast %19 : vector<4x24xf32> to vector<4x24x1xf32>
    %21 = vector.broadcast %20 : vector<4x24x1xf32> to vector<4x24x72xf32>
    %22 = arith.subf %18, %21 : vector<4x24x72xf32>
    %23 = math.exp %22 : vector<4x24x72xf32>
    %cst_9 = arith.constant dense<0.000000e+00> : vector<4x24xf32>
    %24 = vector.multi_reduction <add>, %23, %cst_9 [2] : vector<4x24x72xf32> to vector<4x24xf32>
    %25 = vector.shape_cast %24 : vector<4x24xf32> to vector<4x24x1xf32>
    %26 = tpu.reciprocal %25 {approx = true} : vector<4x24x1xf32> -> vector<4x24x1xf32>
    %27 = vector.broadcast %26 : vector<4x24x1xf32> to vector<4x24x72xf32>
    %28 = arith.mulf %23, %27 : vector<4x24x72xf32>
    %29 = arith.truncf %28 : vector<4x24x72xf32> to vector<4x24x72xbf16>
    %c0_10 = arith.constant 0 : index
    %c0_11 = arith.constant 0 : index
    %c0_12 = arith.constant 0 : index
    %30 = vector.load %arg18[%c0_10, %c0_11, %c0_12] : memref<4x72x16xbf16, #tpu.memory_space<vmem>>, vector<4x72x16xbf16>
    %cst_13 = arith.constant dense<0.000000e+00> : vector<4x24x16xf32>
    %31 = tpu.matmul %29, %30, %cst_13 {dimension_numbers = #tpu.dot_dimension_numbers<[2], [1], [1], [2], [0, 0, 0, 1, 1, 2], [0], [0]>} : vector<4x24x72xbf16>, vector<4x72x16xbf16>, vector<4x24x16xf32> -> vector<4x24x16xf32>
    %32 = vector.extract_strided_slice %31 {offsets = [0, 0, 0], sizes = [1, 24, 16], strides = [1, 1, 1]} : vector<4x24x16xf32> to vector<1x24x16xf32>
    %33 = vector.shape_cast %32 : vector<1x24x16xf32> to vector<24x16xf32>
    %34 = arith.truncf %33 : vector<24x16xf32> to vector<24x16xbf16>
    %c0_14 = arith.constant 0 : index
    %c0_15 = arith.constant 0 : index
    %35 = vector.load %arg19[%c0_14, %c0_15] : memref<24x64xbf16, #tpu.memory_space<vmem>>, vector<24x16xbf16>
    tpu.vector_store %arg19[%c0_14, %c0_15], %34 {strides = array<i32>} : memref<24x64xbf16, #tpu.memory_space<vmem>>, vector<24x16xbf16>,
    %36 = vector.extract_strided_slice %31 {offsets = [1, 0, 0], sizes = [1, 24, 16], strides = [1, 1, 1]} : vector<4x24x16xf32> to vector<1x24x16xf32>
    %37 = vector.shape_cast %36 : vector<1x24x16xf32> to vector<24x16xf32>
    %38 = arith.truncf %37 : vector<24x16xf32> to vector<24x16xbf16>
    %c0_16 = arith.constant 0 : index
    %c16 = arith.constant 16 : index
    %39 = vector.load %arg19[%c0_16, %c16] : memref<24x64xbf16, #tpu.memory_space<vmem>>, vector<24x16xbf16>
    tpu.vector_store %arg19[%c0_16, %c16], %38 {strides = array<i32>} : memref<24x64xbf16, #tpu.memory_space<vmem>>, vector<24x16xbf16>,
    %40 = vector.extract_strided_slice %31 {offsets = [2, 0, 0], sizes = [1, 24, 16], strides = [1, 1, 1]} : vector<4x24x16xf32> to vector<1x24x16xf32>
    %41 = vector.shape_cast %40 : vector<1x24x16xf32> to vector<24x16xf32>
    %42 = arith.truncf %41 : vector<24x16xf32> to vector<24x16xbf16>
    %c0_17 = arith.constant 0 : index
    %c32 = arith.constant 32 : index
    %43 = vector.load %arg19[%c0_17, %c32] : memref<24x64xbf16, #tpu.memory_space<vmem>>, vector<24x16xbf16>
    tpu.vector_store %arg19[%c0_17, %c32], %42 {strides = array<i32>} : memref<24x64xbf16, #tpu.memory_space<vmem>>, vector<24x16xbf16>,
    %44 = vector.extract_strided_slice %31 {offsets = [3, 0, 0], sizes = [1, 24, 16], strides = [1, 1, 1]} : vector<4x24x16xf32> to vector<1x24x16xf32>
    %45 = vector.shape_cast %44 : vector<1x24x16xf32> to vector<24x16xf32>
    %46 = arith.truncf %45 : vector<24x16xf32> to vector<24x16xbf16>
    %c0_18 = arith.constant 0 : index
    %c48 = arith.constant 48 : index
    %47 = vector.load %arg19[%c0_18, %c48] : memref<24x64xbf16, #tpu.memory_space<vmem>>, vector<24x16xbf16>
    tpu.vector_store %arg19[%c0_18, %c48], %46 {strides = array<i32>} : memref<24x64xbf16, #tpu.memory_space<vmem>>, vector<24x16xbf16>,
    %c0_19 = arith.constant 0 : index
    %c0_20 = arith.constant 0 : index
    %48 = vector.load %arg19[%c0_19, %c0_20] : memref<24x64xbf16, #tpu.memory_space<vmem>>, vector<24x64xbf16>
    %c0_21 = arith.constant 0 : index
    %c0_22 = arith.constant 0 : index
    %49 = vector.load %arg7[%c0_21, %c0_22] : memref<64x64xbf16, #tpu.memory_space<vmem>>, vector<64x64xbf16>
    %cst_23 = arith.constant dense<0.000000e+00> : vector<24x64xf32>
    %50 = tpu.matmul %48, %49, %cst_23 {dimension_numbers = #tpu.dot_dimension_numbers<[1], [0], [0], [1], [0, 0, 1, 1], [], []>} : vector<24x64xbf16>, vector<64x64xbf16>, vector<24x64xf32> -> vector<24x64xf32>
    %c0_24 = arith.constant 0 : index
    %c0_25 = arith.constant 0 : index
    %51 = vector.load %arg8[%c0_24, %c0_25] : memref<1x64xf32, #tpu.memory_space<vmem>>, vector<1x64xf32>
    %52 = vector.shape_cast %51 : vector<1x64xf32> to vector<64xf32>
    %53 = vector.shape_cast %52 : vector<64xf32> to vector<1x64xf32>
    %54 = vector.broadcast %53 : vector<1x64xf32> to vector<24x64xf32>
    %55 = arith.addf %50, %54 : vector<24x64xf32>
    %56 = arith.addf %7, %55 : vector<24x64xf32>
    %c0_26 = arith.constant 0 : index
    %c0_27 = arith.constant 0 : index
    %57 = vector.load %arg9[%c0_26, %c0_27] : memref<1x64xf32, #tpu.memory_space<vmem>>, vector<1x64xf32>
    %58 = vector.shape_cast %57 : vector<1x64xf32> to vector<64xf32>
    %c0_28 = arith.constant 0 : index
    %c0_29 = arith.constant 0 : index
    %59 = vector.load %arg10[%c0_28, %c0_29] : memref<1x64xf32, #tpu.memory_space<vmem>>, vector<1x64xf32>
    %60 = vector.shape_cast %59 : vector<1x64xf32> to vector<64xf32>
    %cst_30 = arith.constant dense<0.000000e+00> : vector<24xf32>
    %61 = vector.multi_reduction <add>, %56, %cst_30 [1] : vector<24x64xf32> to vector<24xf32>
    %62 = vector.shape_cast %61 : vector<24xf32> to vector<24x1xf32>
    %cst_31 = arith.constant 6.400000e+01 : f32
    %63 = vector.broadcast %cst_31 : f32 to vector<24x1xf32>
    %64 = arith.divf %62, %63 : vector<24x1xf32>
    %65 = vector.broadcast %64 : vector<24x1xf32> to vector<24x64xf32>
    %66 = arith.subf %56, %65 : vector<24x64xf32>
    %67 = arith.mulf %66, %66 : vector<24x64xf32>
    %cst_32 = arith.constant dense<0.000000e+00> : vector<24xf32>
    %68 = vector.multi_reduction <add>, %67, %cst_32 [1] : vector<24x64xf32> to vector<24xf32>
    %69 = vector.shape_cast %68 : vector<24xf32> to vector<24x1xf32>
    %cst_33 = arith.constant 6.400000e+01 : f32
    %70 = vector.broadcast %cst_33 : f32 to vector<24x1xf32>
    %71 = arith.divf %69, %70 : vector<24x1xf32>
    %72 = vector.broadcast %64 : vector<24x1xf32> to vector<24x64xf32>
    %73 = arith.subf %56, %72 : vector<24x64xf32>
    %cst_34 = arith.constant 9.99999974E-6 : f32
    %74 = vector.broadcast %cst_34 : f32 to vector<24x1xf32>
    %75 = arith.addf %71, %74 : vector<24x1xf32>
    %76 = math.rsqrt %75 : vector<24x1xf32>
    %77 = vector.broadcast %76 : vector<24x1xf32> to vector<24x64xf32>
    %78 = arith.mulf %73, %77 : vector<24x64xf32>
    %79 = vector.shape_cast %58 : vector<64xf32> to vector<1x64xf32>
    %80 = vector.broadcast %79 : vector<1x64xf32> to vector<24x64xf32>
    %81 = arith.mulf %78, %80 : vector<24x64xf32>
    %82 = vector.shape_cast %60 : vector<64xf32> to vector<1x64xf32>
    %83 = vector.broadcast %82 : vector<1x64xf32> to vector<24x64xf32>
    %84 = arith.addf %81, %83 : vector<24x64xf32>
    %85 = arith.truncf %84 : vector<24x64xf32> to vector<24x64xbf16>
    %c0_35 = arith.constant 0 : index
    %c0_36 = arith.constant 0 : index
    %86 = vector.load %arg11[%c0_35, %c0_36] : memref<64x256xbf16, #tpu.memory_space<vmem>>, vector<64x256xbf16>
    %cst_37 = arith.constant dense<0.000000e+00> : vector<24x256xf32>
    %87 = tpu.matmul %85, %86, %cst_37 {dimension_numbers = #tpu.dot_dimension_numbers<[1], [0], [0], [1], [0, 0, 1, 1], [], []>} : vector<24x64xbf16>, vector<64x256xbf16>, vector<24x256xf32> -> vector<24x256xf32>
    %c0_38 = arith.constant 0 : index
    %c0_39 = arith.constant 0 : index
    %88 = vector.load %arg12[%c0_38, %c0_39] : memref<1x256xf32, #tpu.memory_space<vmem>>, vector<1x256xf32>
    %89 = vector.shape_cast %88 : vector<1x256xf32> to vector<256xf32>
    %90 = vector.shape_cast %89 : vector<256xf32> to vector<1x256xf32>
    %91 = vector.broadcast %90 : vector<1x256xf32> to vector<24x256xf32>
    %92 = arith.addf %87, %91 : vector<24x256xf32>
    %93 = arith.truncf %92 : vector<24x256xf32> to vector<24x256xbf16>
    %cst_40 = arith.constant 1.703130e+00 : bf16
    %94 = vector.broadcast %cst_40 : bf16 to vector<24x256xbf16>
    %95 = arith.mulf %94, %93 : vector<24x256xbf16>
    %96 = arith.negf %95 : vector<24x256xbf16>
    %97 = math.exp %96 : vector<24x256xbf16>
    %cst_41 = arith.constant 1.000000e+00 : bf16
    %98 = vector.broadcast %cst_41 : bf16 to vector<24x256xbf16>
    %99 = arith.addf %98, %97 : vector<24x256xbf16>
    %100 = arith.divf %98, %99 : vector<24x256xbf16>
    %101 = arith.mulf %93, %100 : vector<24x256xbf16>
    %c0_42 = arith.constant 0 : index
    %c0_43 = arith.constant 0 : index
    %102 = vector.load %arg13[%c0_42, %c0_43] : memref<256x64xbf16, #tpu.memory_space<vmem>>, vector<256x64xbf16>
    %cst_44 = arith.constant dense<0.000000e+00> : vector<24x64xf32>
    %103 = tpu.matmul %101, %102, %cst_44 {dimension_numbers = #tpu.dot_dimension_numbers<[1], [0], [0], [1], [0, 0, 1, 1], [], []>} : vector<24x256xbf16>, vector<256x64xbf16>, vector<24x64xf32> -> vector<24x64xf32>
    %c0_45 = arith.constant 0 : index
    %c0_46 = arith.constant 0 : index
    %104 = vector.load %arg14[%c0_45, %c0_46] : memref<1x64xf32, #tpu.memory_space<vmem>>, vector<1x64xf32>
    %105 = vector.shape_cast %104 : vector<1x64xf32> to vector<64xf32>
    %106 = vector.shape_cast %105 : vector<64xf32> to vector<1x64xf32>
    %107 = vector.broadcast %106 : vector<1x64xf32> to vector<24x64xf32>
    %108 = arith.addf %103, %107 : vector<24x64xf32>
    %109 = arith.addf %56, %108 : vector<24x64xf32>
    %c0_47 = arith.constant 0 : index
    %c0_48 = arith.constant 0 : index
    %c0_49 = arith.constant 0 : index
    %110 = vector.load %arg15[%c0_47, %c0_48, %c0_49] : memref<1x24x64xf32, #tpu.memory_space<vmem>>, vector<1x24x64xf32>
    %111 = vector.shape_cast %110 : vector<1x24x64xf32> to vector<24x64xf32>
    %112 = vector.shape_cast %109 : vector<24x64xf32> to vector<1x24x64xf32>
    tpu.vector_store %arg15[%c0_47, %c0_48, %c0_49], %112 {strides = array<i32>} : memref<1x24x64xf32, #tpu.memory_space<vmem>>, vector<1x24x64xf32>,
    return
  }
  func.func @transform_0(%arg0: i32, %arg1: i32) -> (i32, i32, i32) {
    %c0_i32 = arith.constant 0 : i32
    %c0_i32_0 = arith.constant 0 : i32
    %c0_i32_1 = arith.constant 0 : i32
    return %arg0, %c0_i32, %c0_i32_0 : i32, i32, i32
  }
  func.func @transform_1(%arg0: i32, %arg1: i32) -> (i32, i32) {
    %c0_i32 = arith.constant 0 : i32
    %c0_i32_0 = arith.constant 0 : i32
    %c0_i32_1 = arith.constant 0 : i32
    return %c0_i32, %c0_i32_0 : i32, i32
  }
  func.func @transform_2(%arg0: i32, %arg1: i32) -> (i32, i32) {
    %c0_i32 = arith.constant 0 : i32
    %c0_i32_0 = arith.constant 0 : i32
    %c0_i32_1 = arith.constant 0 : i32
    return %c0_i32, %c0_i32_0 : i32, i32
  }
  func.func @transform_3(%arg0: i32, %arg1: i32) -> (i32, i32) {
    %c0_i32 = arith.constant 0 : i32
    %c0_i32_0 = arith.constant 0 : i32
    %c0_i32_1 = arith.constant 0 : i32
    return %c0_i32, %c0_i32_0 : i32, i32
  }
  func.func @transform_4(%arg0: i32, %arg1: i32) -> (i32, i32) {
    %c0_i32 = arith.constant 0 : i32
    %c0_i32_0 = arith.constant 0 : i32
    %c0_i32_1 = arith.constant 0 : i32
    return %c0_i32, %c0_i32_0 : i32, i32
  }
  func.func @transform_5(%arg0: i32, %arg1: i32) -> (i32, i32) {
    %c0_i32 = arith.constant 0 : i32
    %c0_i32_0 = arith.constant 0 : i32
    %c0_i32_1 = arith.constant 0 : i32
    return %c0_i32, %c0_i32_0 : i32, i32
  }
  func.func @transform_6(%arg0: i32, %arg1: i32) -> (i32, i32) {
    %c0_i32 = arith.constant 0 : i32
    %c0_i32_0 = arith.constant 0 : i32
    %c0_i32_1 = arith.constant 0 : i32
    return %c0_i32, %c0_i32_0 : i32, i32
  }
  func.func @transform_7(%arg0: i32, %arg1: i32) -> (i32, i32) {
    %c0_i32 = arith.constant 0 : i32
    %c0_i32_0 = arith.constant 0 : i32
    %c0_i32_1 = arith.constant 0 : i32
    return %c0_i32, %c0_i32_0 : i32, i32
  }
  func.func @transform_8(%arg0: i32, %arg1: i32) -> (i32, i32) {
    %c0_i32 = arith.constant 0 : i32
    %c0_i32_0 = arith.constant 0 : i32
    %c0_i32_1 = arith.constant 0 : i32
    return %c0_i32, %c0_i32_0 : i32, i32
  }
  func.func @transform_9(%arg0: i32, %arg1: i32) -> (i32, i32) {
    %c0_i32 = arith.constant 0 : i32
    %c0_i32_0 = arith.constant 0 : i32
    %c0_i32_1 = arith.constant 0 : i32
    return %c0_i32, %c0_i32_0 : i32, i32
  }
  func.func @transform_10(%arg0: i32, %arg1: i32) -> (i32, i32) {
    %c0_i32 = arith.constant 0 : i32
    %c0_i32_0 = arith.constant 0 : i32
    %c0_i32_1 = arith.constant 0 : i32
    return %c0_i32, %c0_i32_0 : i32, i32
  }
  func.func @transform_11(%arg0: i32, %arg1: i32) -> (i32, i32) {
    %c0_i32 = arith.constant 0 : i32
    %c0_i32_0 = arith.constant 0 : i32
    %c0_i32_1 = arith.constant 0 : i32
    return %c0_i32, %c0_i32_0 : i32, i32
  }
  func.func @transform_12(%arg0: i32, %arg1: i32) -> (i32, i32) {
    %c0_i32 = arith.constant 0 : i32
    %c0_i32_0 = arith.constant 0 : i32
    %c0_i32_1 = arith.constant 0 : i32
    return %c0_i32, %c0_i32_0 : i32, i32
  }
  func.func @transform_13(%arg0: i32, %arg1: i32) -> (i32, i32, i32) {
    %c0_i32 = arith.constant 0 : i32
    %c0_i32_0 = arith.constant 0 : i32
    return %arg0, %arg1, %c0_i32 : i32, i32, i32
  }
}

</mosaic_0001>

<bundles_post_ra>
// kernel: vit3d_forward.2
= control target key start
LH: loop header
LB: loop body
LE: loop exit
PB: predicated region body
PF: predicated region fallthrough
CT: control target
= control target key end

     0   :  { %s3712_s25 = smov 0   ;;  %s3714_s26 = smov 0   ;;  %s4444_s0 = inlined_call_operand.vmem [shape: f32[2,72,64], index: 0, kind: input, shape index: {}]   ;;  %s4445_s1 = inlined_call_operand.vmem [shape: f32[1,64], index: 1, kind: input, shape index: {}]   ;;  %s4446_s2 = inlined_call_operand.vmem [shape: f32[1,64], index: 2, kind: input, shape index: {}]   ;;  %s4447_s3 = inlined_call_operand.vmem [shape: bf16[64,192], index: 3, kind: input, shape index: {}]   ;;  %s4448_s4 = inlined_call_operand.vmem [shape: f32[1,192], index: 4, kind: input, shape index: {}]   ;;  %s4449_s5 = inlined_call_operand.vmem [shape: bf16[64,64], index: 5, kind: input, shape index: {}]   ;;  %s4450_s6 = inlined_call_operand.vmem [shape: f32[1,64], index: 6, kind: input, shape index: {}]   ;;  %s4451_s7 = inlined_call_operand.vmem [shape: f32[1,64], index: 7, kind: input, shape index: {}]   ;;  %s4452_s8 = inlined_call_operand.vmem [shape: f32[1,64], index: 8, kind: input, shape index: {}]   ;;  %s4453_s9 = inlined_call_operand.vmem [shape: bf16[64,256], index: 9, kind: input, shape index: {}]   ;;  %s4454_s10 = inlined_call_operand.vmem [shape: f32[1,256], index: 10, kind: input, shape index: {}]   ;;  %s4455_s11 = inlined_call_operand.vmem [shape: bf16[256,64], index: 11, kind: input, shape index: {}]   ;;  %s4456_s12 = inlined_call_operand.vmem [shape: f32[1,64], index: 12, kind: input, shape index: {}]   ;;  %s4457_s13 = inlined_call_operand.vmem [shape: f32[2,72,64], index: 13, kind: output, shape index: {}]  }
   0x1   :  { %s3716_s27 = smov 0   ;;  %s3718_s28 = smov 0  }
   0x2   :  { %s3720_s29 = smov 0  }
   0x3 LB: > { %s32_s30 = sadd.s32 1, %s3620_s27  ;;  %s35_s14 = sadd.s32 1, %s3624_s28  ;;  %s3628_s29 = sphi %s3720_s29, %s23_s29   ;;  %s3624_s28 = sphi %s3718_s28, %s4463_s28   ;;  %s3620_s27 = sphi %s3716_s27, %s4462_s27   ;;  %s3616_s26 = sphi %s3714_s26, %s4461_s26   ;;  %s3612_s25 = sphi %s3712_s25, %s4460_s25  }
   0x4   : > { %p33_p0 = scmp.ge.s32.totalorder %s32_s30, 3  ;;  %p2923_p1 = scmp.ge.s32.totalorder %s3628_s29, 1 }
   0x5   : > { %p401_p2 = scmp.lt.s32.totalorder %s3628_s29, 7 }
   0x6   : > { %s4465_s30 = smov (%p33_p0, %s32_s30), 0  ;;  %s4467_s14 = smov (!%p33_p0, %s35_s14), %s3624_s28 }
   0x7   : > { %p402_p3 = pnand %p2923_p1, %p401_p2  ;;  %p37_p4 = scmp.ge.s32.totalorder %s4467_s14, 2 }
   0x8   : > { %p449_p5 = scmp.lt.s32.totalorder (!%p402_p3), %s3616_s26, 1  ;;  %s454_s15 = smul.u32 (!%p402_p3), 3, %s3612_s25 }
   0x9   : > { %s4469_s14 = smov (%p37_p4, %s4467_s14), 0  ;;  %405 = sbr.rel (%p402_p3) target bundleno = 2859 (0xb2b), region = 72 }
   0xa   : > { %4458 = sst [smem:[#allocation6_spill]] %s4469_s14  ;;  %p457_p6 = scmp.lt.s32.totalorder (!%p402_p3), %s454_s15, 8 }
   0xb   : > { %p2926_p7 = scmp.ne.s32.totalorder (!%p402_p3), %s3612_s25, 0 }
   0xe   : > { %s4471_s26 = smov (!%p449_p5, %s3616_s26), 1  ;;  %s4473_s15 = smov (!%p457_p6, %s454_s15), 8 }
   0xf   : > { %s3289_s16 = smul.u32 72, %s4471_s26  ;;  %s3632_s17 = smov (!%p2926_p7), 112  }
  0x10   : > { %s3290_s20 = smul.u32 9, %s4471_s26  ;;  %s3633_s18 = smov (!%p2926_p7), 80  }
  0x11   : > { %s3748_s19 = scalar_lea.vmem %s4444_s0, %s3289_s16  ;;  %470 = sbr.rel (%p2926_p7) target bundleno = 1017 (0x3f9), region = 76 }
  0x12   : > { %s460_s21 = sadd.s32 %s3290_s20, %s4473_s15  ;;  %s3631_s16 = smov (!%p2926_p7), 96  }
  0x13   : > { %s2925_s22 = sshll.u32 %s460_s21, 3  ;;  %s3634_s20 = smov (!%p2926_p7), 64  }
  0x14   : > { %s3753_s14 = scalar_lea.vmem %s4457_s13, %s2925_s22  ;;  %s3635_s21 = smov (!%p2926_p7), 48  }
  0x15   : > { %s3636_s22 = smov (!%p2926_p7), 32   ;;  %s3637_s23 = smov (!%p2926_p7), 16  }
  0x16   : > { %v471_v0 = vld [vmem:[%s3748_s19] sm:$0xff]  ;;  %vm482_vm0 = vcmask 523264   ;;  %v473_v1 = vld [vmem:[%s3748_s19 + $0x10] sm:$0xff]  ;;  %v472_v2 = vld [vmem:[%s3748_s19 + $0x8] sm:$0xff]  ;;  %vm829_vm1 = vcmask 125952   ;;  %vm915_vm2 = vcmask 584704  }
  0x17   : > { %v483_v3 = vsel %vm482_vm0, %v471_v0, 0.0  ;;  %v489_v4 = vsel %vm482_vm0, %v473_v1, 0.0  ;;  %v474_v5 = vld [vmem:[%s3748_s19 + $0x18] sm:$0xff]  ;;  %v475_v6 = vld [vmem:[%s3748_s19 + $0x20] sm:$0xff]  ;;  %v476_v7 = vld [vmem:[%s3748_s19 + $0x28] sm:$0xff]  ;;  %v486_v8 = vsel %vm482_vm0, %v472_v2, 0.0 }
  0x18   : > { %484 = vadd.xlane.f32.xlu0 %v483_v3  ;;  %490 = vadd.xlane.f32.xlu1 %v489_v4  ;;  %v492_v9 = vsel %vm482_vm0, %v474_v5, 0.0  ;;  %v495_v10 = vsel %vm482_vm0, %v475_v6, 0.0  ;;  %v498_v11 = vsel %vm482_vm0, %v476_v7, 0.0  ;;  %v477_v12 = vld [vmem:[%s3748_s19 + $0x30] sm:$0xff]  ;;  %v478_v13 = vld [vmem:[%s3748_s19 + $0x38] sm:$0xff]  ;;  %v479_v16 = vld [vmem:[%s3748_s19 + $0x40] sm:$0xff] }
  0x19   : > { %v501_v14 = vsel %vm482_vm0, %v477_v12, 0.0  ;;  %v504_v15 = vsel %vm482_vm0, %v478_v13, 0.0  ;;  %v507_v17 = vsel %vm482_vm0, %v479_v16, 0.0  ;;  %v3424_v63 = vld [vmem:[%s4447_s3 + $0x34] ss:$8 sps:$4 sm:$0xff]  }
  0x1a   : > { %719 = vmatprep.subr.bf16.mxu0 %v3424_v63  ;;  %3277 = vmatprep.subr.bf16.mxu1 %v3424_v63  ;;  %v3430_v3 = vld [vmem:[%s4447_s3 + $0x14] ss:$8 sps:$4 sm:$0xff]   ;;  %v3432_v4 = vld [vmem:[%s4447_s3 + $0x10] ss:$8 sps:$4 sm:$0xff]  }
  0x1c   : > { %487 = vadd.xlane.f32.xlu0 %v486_v8  ;;  %493 = vadd.xlane.f32.xlu1 %v492_v9 }
  0x20   : > { %496 = vadd.xlane.f32.xlu0 %v495_v10  ;;  %499 = vadd.xlane.f32.xlu1 %v498_v11 }
  0x24   : > { %502 = vadd.xlane.f32.xlu0 %v501_v14  ;;  %505 = vadd.xlane.f32.xlu1 %v504_v15 }
  0x28   : > { %508 = vadd.xlane.f32.xlu0 %v507_v17 }
  0xa1   : > { %v485_v18 = vpop.xlane.xlu0 %484  ;;  %v491_v19 = vpop.xlane.xlu1 %490 }
  0xa2   : > { %v511_v20 = vmul.f32 0.015625, %v485_v18  ;;  %v513_v21 = vmul.f32 0.015625, %v491_v19 }
  0xa4   : > { %v3774_v22 = vsub.f32 %v471_v0, %v511_v20  ;;  %v3776_v23 = vsub.f32 %v473_v1, %v513_v21  ;;  %v3426_v0 = vld [vmem:[%s4447_s3 + $0x30] ss:$8 sps:$4 sm:$0xff]   ;;  %v3427_v1 = vld [vmem:[%s4447_s3 + $0x24] ss:$8 sps:$4 sm:$0xff]  }
  0xa5   : > { %v488_v24 = vpop.xlane.xlu0 %487  ;;  %v494_v25 = vpop.xlane.xlu1 %493  ;;  %720 = vmatpush1.bf16.msra.mxu0 %v3426_v0  ;;  %3281 = vmatpush1.bf16.msra.mxu1 %v3426_v0 }
  0xa6   : > { %v512_v26 = vmul.f32 0.015625, %v488_v24  ;;  %v514_v27 = vmul.f32 0.015625, %v494_v25  ;;  %v529_v28 = vmul.f32 %v3774_v22, %v3774_v22  ;;  %v531_v29 = vmul.f32 %v3776_v23, %v3776_v23  ;;  %721 = vmatprep.subr.bf16.mxu0 %v3427_v1  ;;  %3278 = vmatprep.subr.bf16.mxu1 %v3427_v1 }
  0xa8   : > { %v3782_v30 = vsub.f32 %v472_v2, %v512_v26  ;;  %v3784_v31 = vsub.f32 %v474_v5, %v514_v27  ;;  %v538_v32 = vsel %vm482_vm0, %v529_v28, 0.0  ;;  %v544_v35 = vsel %vm482_vm0, %v531_v29, 0.0  ;;  %v3429_v2 = vld [vmem:[%s4447_s3 + $0x20] ss:$8 sps:$4 sm:$0xff]   ;;  %v3433_v5 = vld [vmem:[%s4447_s3 + $0x4] ss:$8 sps:$4 sm:$0xff]  }
  0xa9   : > { %539 = vadd.xlane.f32.xlu1 %v538_v32  ;;  %v497_v33 = vpop.xlane.xlu0 %496  ;;  %v500_v34 = vpop.xlane.xlu1 %499  ;;  %722 = vmatpush1.bf16.msra.mxu0 %v3429_v2 }
  0xaa   : > { %v515_v36 = vmul.f32 0.015625, %v497_v33  ;;  %v516_v37 = vmul.f32 0.015625, %v500_v34  ;;  %v530_v38 = vmul.f32 %v3782_v30, %v3782_v30  ;;  %v532_v39 = vmul.f32 %v3784_v31, %v3784_v31  ;;  %3282 = vmatpush1.bf16.msra.mxu1 %v3429_v2  ;;  %723 = vmatprep.subr.bf16.mxu0 %v3430_v3 }
  0xab   : > { %3279 = vmatprep.subr.bf16.mxu1 %v3430_v3 }
  0xac   : > { %v3792_v40 = vsub.f32 %v475_v6, %v515_v36  ;;  %v3794_v41 = vsub.f32 %v476_v7, %v516_v37  ;;  %v541_v42 = vsel %vm482_vm0, %v530_v38, 0.0  ;;  %v547_v45 = vsel %vm482_vm0, %v532_v39, 0.0  ;;  %v3435_v7 = vld [vmem:[%s4447_s3] ss:$8 sps:$4 sm:$0xff]  }
  0xad   : > { %545 = vadd.xlane.f32.xlu1 %v544_v35  ;;  %542 = vadd.xlane.f32.xlu0 %v541_v42  ;;  %v503_v43 = vpop.xlane.xlu0 %502  ;;  %v506_v44 = vpop.xlane.xlu1 %505  ;;  %v3630_v6 = vmov 0  }
  0xae   : > { %v517_v46 = vmul.f32 0.015625, %v503_v43  ;;  %v518_v47 = vmul.f32 0.015625, %v506_v44  ;;  %v533_v48 = vmul.f32 %v3792_v40, %v3792_v40  ;;  %v534_v49 = vmul.f32 %v3794_v41, %v3794_v41  ;;  %743 = vmatprep.mubr.bf16.mxu0 %v3630_v6  ;;  %724 = vmatpush1.bf16.msra.mxu0 %v3432_v4  ;;  %v2927_v43 = vld [vmem:[%s4445_s1] ss:$0 sm:$0xff] }
  0xaf   : > { %725 = vmatprep.subr.bf16.mxu0 %v3433_v5  ;;  %3283 = vmatpush1.bf16.msra.mxu1 %v3432_v4 }
  0xb0   : > { %v3802_v50 = vsub.f32 %v477_v12, %v517_v46  ;;  %v3804_v51 = vsub.f32 %v478_v13, %v518_v47  ;;  %v550_v52 = vsel %vm482_vm0, %v533_v48, 0.0  ;;  %v553_v55 = vsel %vm482_vm0, %v534_v49, 0.0  ;;  %3280 = vmatprep.subr.bf16.mxu1 %v3433_v5  ;;  %773 = vmatprep.mubr.bf16.mxu1 %v3630_v6  ;;  %v2928_v48 = vld [vmem:[%s4446_s2] ss:$0 sm:$0xff] }
  0xb1   : > { %548 = vadd.xlane.f32.xlu0 %v547_v45  ;;  %551 = vadd.xlane.f32.xlu1 %v550_v52  ;;  %v509_v53 = vpop.xlane.xlu0 %508 }
  0xb2   : > { %v519_v54 = vmul.f32 0.015625, %v509_v53  ;;  %v535_v56 = vmul.f32 %v3802_v50, %v3802_v50  ;;  %v536_v57 = vmul.f32 %v3804_v51, %v3804_v51  ;;  %726 = vmatpush1.bf16.msra.mxu0 %v3435_v7 }
  0xb3   : > { %3284 = vmatpush1.bf16.msra.mxu1 %v3435_v7 }
  0xb4   : > { %v3812_v58 = vsub.f32 %v479_v16, %v519_v54  ;;  %v556_v59 = vsel %vm482_vm0, %v535_v56, 0.0  ;;  %v559_v60 = vsel %vm482_vm0, %v536_v57, 0.0 }
  0xb5   : > { %554 = vadd.xlane.f32.xlu0 %v553_v55  ;;  %557 = vadd.xlane.f32.xlu1 %v556_v59 }
  0xb6   : > { %v537_v61 = vmul.f32 %v3812_v58, %v3812_v58 }
  0xb8   : > { %v562_v62 = vsel %vm482_vm0, %v537_v61, 0.0 }
  0xb9   : > { %560 = vadd.xlane.f32.xlu0 %v559_v60  ;;  %563 = vadd.xlane.f32.xlu1 %v562_v62 }
 0x132   : > { %v540_v8 = vpop.xlane.xlu1 %539 }
 0x133   : > { %v565_v9 = vmul.f32 0.015625, %v540_v8 }
 0x135   : > { %v574_v10 = vadd.f32 1e-05, %v565_v9 }
 0x136   : > { %v546_v11 = vpop.xlane.xlu1 %545  ;;  %v543_v12 = vpop.xlane.xlu0 %542 }
 0x137   : > { %3436 = vrsqrt.f32 %v574_v10  ;;  %v567_v13 = vmul.f32 0.015625, %v546_v11  ;;  %v566_v14 = vmul.f32 0.015625, %v543_v12 }
 0x139   : > { %v575_v15 = vadd.f32 1e-05, %v566_v14  ;;  %v576_v16 = vadd.f32 1e-05, %v567_v13 }
 0x13a   : > { %v552_v17 = vpop.xlane.xlu1 %551  ;;  %v549_v18 = vpop.xlane.xlu0 %548 }
 0x13b   : > { %v568_v19 = vmul.f32 0.015625, %v549_v18  ;;  %3438 = vrsqrt.f32 %v575_v15  ;;  %v569_v21 = vmul.f32 0.015625, %v552_v17  ;;  %v646_v15 = vlaneseq  ;;  %v644_v18 = vld [vmem:[%s4448_s4] sm:$0x3] }
 0x13c   : > { %3440 = vrsqrt.f32 %v576_v16 }
 0x13d   : > { %v577_v20 = vadd.f32 1e-05, %v568_v19  ;;  %v578_v32 = vadd.f32 1e-05, %v569_v21  ;;  %v647_v16 = vshrl.u32 %v646_v15, 7 }
 0x13e   : > { %v558_v24 = vpop.xlane.xlu1 %557  ;;  %v555_v25 = vpop.xlane.xlu0 %554 }
 0x13f   : > { %v571_v26 = vmul.f32 0.015625, %v558_v24  ;;  %v570_v27 = vmul.f32 0.015625, %v555_v25  ;;  %3442 = vrsqrt.f32 %v577_v20  ;;  %v648_v17 = vsub.s32 0, %v647_v16 }
 0x140   : > { %v652_v19 = vsub.s32 1, %v647_v16 }
 0x141   : > { %v580_v28 = vadd.f32 1e-05, %v571_v26  ;;  %v579_v29 = vadd.f32 1e-05, %v570_v27  ;;  %v3871_v20 = vrot.slane %v644_v18, %v648_v17 }
 0x142   : > { %v564_v33 = vpop.xlane.xlu1 %563  ;;  %v561_v34 = vpop.xlane.xlu0 %560  ;;  %v3873_v21 = vrot.slane %v644_v18, %v652_v19 }
 0x143   : > { %3444 = vrsqrt.f32 %v580_v28  ;;  %v573_v35 = vmul.f32 0.015625, %v564_v33  ;;  %v572_v36 = vmul.f32 0.015625, %v561_v34 }
 0x144   : > { %v3437_v37 = vpop.eup %3436  ;;  %3446 = vrsqrt.f32 %v579_v29 }
 0x145   : > { %v582_v38 = vadd.f32 1e-05, %v573_v35  ;;  %v581_v39 = vadd.f32 1e-05, %v572_v36  ;;  %3448 = vrsqrt.f32 %v578_v32  ;;  %v592_v42 = vmul.f32 %v3437_v37, %v3774_v22 }
 0x147   : > { %3450 = vrsqrt.f32 %v582_v38  ;;  %v607_v46 = vmul.f32 %v2927_v43, %v592_v42 }
 0x148   : > { %3452 = vrsqrt.f32 %v581_v39  ;;  %v3439_v44 = vpop.eup %3438 }
 0x149   : > { %v593_v45 = vmul.f32 %v3439_v44, %v3782_v30  ;;  %v3441_v47 = vpop.eup %3440  ;;  %v622_v53 = vadd.f32 %v2928_v48, %v607_v46 }
 0x14a   : > { %v594_v22 = vmul.f32 %v3441_v47, %v3776_v23 }
 0x14b   : > { %v608_v49 = vmul.f32 %v2927_v43, %v593_v45 }
 0x14c   : > { %v3443_v52 = vpop.eup %3442  ;;  %v609_v30 = vmul.f32 %v2927_v43, %v594_v22 }
 0x14d   : > { %v623_v54 = vadd.f32 %v2928_v48, %v608_v49  ;;  %v595_v55 = vmul.f32 %v3443_v52, %v3784_v31 }
 0x14e   : > { %v624_v23 = vadd.f32 %v2928_v48, %v609_v30 }
 0x14f   : > { %v631_v57 = vpack.c.bf16 %v623_v54, %v622_v53  ;;  %v610_v59 = vmul.f32 %v2927_v43, %v595_v55 }
 0x150   : > { %v3445_v56 = vpop.eup %3444 }
 0x151   : > { %v3447_v60 = vpop.eup %3446  ;;  %2937 = vmatmul.mubr.msk.bf16.vlgmr.msra.gmra.mxu0 %vm482_vm0, %v631_v57  ;;  %v598_v61 = vmul.f32 %v3445_v56, %v3802_v50  ;;  %v625_v0 = vadd.f32 %v2928_v48, %v610_v59 }
 0x152   : > { %v3449_v62 = vpop.eup %3448  ;;  %753 = vmatprep.mubr.bf16.mxu0 %v3630_v6  ;;  %v597_v1 = vmul.f32 %v3447_v60, %v3794_v41 }
 0x153   : > { %v613_v3 = vmul.f32 %v2927_v43, %v598_v61  ;;  %v596_v4 = vmul.f32 %v3449_v62, %v3792_v40  ;;  %v632_v5 = vpack.c.bf16 %v625_v0, %v624_v23 }
 0x154   : > { %v3451_v63 = vpop.eup %3450  ;;  %v612_v8 = vmul.f32 %v2927_v43, %v597_v1 }
 0x155   : > { %v3453_v2 = vpop.eup %3452  ;;  %v600_v9 = vmul.f32 %v3451_v63, %v3812_v58  ;;  %v628_v50 = vadd.f32 %v2928_v48, %v613_v3  ;;  %v611_v11 = vmul.f32 %v2927_v43, %v596_v4 }
 0x156   : > { %v599_v31 = vmul.f32 %v3453_v2, %v3804_v51  ;;  %v627_v12 = vadd.f32 %v2928_v48, %v612_v8 }
 0x157   : > { %v615_v13 = vmul.f32 %v2927_v43, %v600_v9  ;;  %v626_v51 = vadd.f32 %v2928_v48, %v611_v11 }
 0x158   : > { %v614_v7 = vmul.f32 %v2927_v43, %v599_v31 }
 0x159   : > { %2938 = vmatmul.mubr.msk.bf16.gmra.mxu0 %vm482_vm0, %v632_v5  ;;  %v633_v40 = vpack.c.bf16 %v627_v12, %v626_v51  ;;  %v630_v14 = vadd.f32 %v2928_v48, %v615_v13 }
 0x15a   : > { %v629_v10 = vadd.f32 %v2928_v48, %v614_v7  ;;  %763 = vmatprep.mubr.bf16.mxu0 %v3630_v6 }
 0x15b   : > { %v635_v58 = vpack.c.bf16 %v630_v14, %v630_v14 }
 0x15c   : > { %v634_v41 = vpack.c.bf16 %v629_v10, %v628_v50 }
 0x15e   : > { %2940 = vmatmul.mubr.msk.bf16.vlgmr.msra.gmra.mxu1 %vm482_vm0, %v634_v41 }
 0x15f   : > { %783 = vmatprep.mubr.bf16.mxu1 %v3630_v6 }
 0x161   : > { %2939 = vmatmul.mubr.msk.bf16.gmra.mxu0 %vm482_vm0, %v633_v40 }
 0x166   : > { %2941 = vmatmul.mubr.msk.bf16.gmra.mxu1 %vm482_vm0, %v635_v58 }
 0x211   : > { %v745_v6 = vpop.f32.mrf.mxu0 }
 0x212   : > { %v746_v24 = vadd.f32 %v745_v6, %v3871_v20 }
 0x213   : > { %v747_v25 = vpop.f32.mrf.mxu0 }
 0x214   : > { %v748_v26 = vadd.f32 %v747_v25, %v3873_v21  ;;  %v3073_v27 = vpack.c.bf16 %v746_v24, %v746_v24 }
 0x215   : > { %v749_v28 = vpop.f32.mrf.mxu0 }
 0x216   : > { %v3877_v29 = vpack.c.bf16 %v748_v26, %v748_v26  ;;  %v750_v32 = vadd.f32 %v749_v28, %v3871_v20  ;;  %1108 = vrot.lane.b32.xlu1 %v3073_v27, %s3631_s16  ;;  %830 = vst.msk [vmem:[#allocation2] sm:$0xf] %vm829_vm1, %v3073_v27  ;;  %964 = vrot.lane.b32.xlu0 %v3073_v27, %s3632_s17 }
 0x217   : > { %v751_v33 = vpop.f32.mrf.mxu0 }
 0x218   : > { %955 = vst.msk [vmem:[#allocation4] sm:$0xf] %vm829_vm1, %v3877_v29  ;;  %v752_v34 = vadd.f32 %v751_v33, %v3873_v21  ;;  %v3886_v35 = vpack.c.bf16 %v750_v32, %v750_v32  ;;  %v3344_v3 = vpack.i.bf16 %v750_v32, %v746_v24 }
 0x219   : > { %v755_v36 = vpop.f32.mrf.mxu0 }
 0x21a   : > { %v3888_v37 = vpack.c.bf16 %v752_v34, %v752_v34  ;;  %v756_v38 = vadd.f32 %v755_v36, %v3871_v20  ;;  %831 = vst.msk [vmem:[#allocation2 + $0x4] sm:$0xf] %vm829_vm1, %v3886_v35 }
 0x21b   : > { %v757_v39 = vpop.f32.mrf.mxu0 }
 0x21c   : > { %956 = vst.msk [vmem:[#allocation4 + $0x4] sm:$0xf] %vm829_vm1, %v3888_v37  ;;  %v758_v42 = vadd.f32 %v757_v39, %v3873_v21  ;;  %v3896_v43 = vpack.c.bf16 %v756_v38, %v756_v38 }
 0x21d   : > { %v759_v44 = vpop.f32.mrf.mxu0 }
 0x21e   : > { %v775_v45 = vpop.f32.mrf.mxu1  ;;  %v3898_v46 = vpack.c.bf16 %v758_v42, %v758_v42  ;;  %v760_v47 = vadd.f32 %v759_v44, %v3871_v20  ;;  %832 = vst.msk [vmem:[#allocation2 + $0x8] sm:$0xf] %vm829_vm1, %v3896_v43 }
 0x21f   : > { %v776_v48 = vadd.f32 %v775_v45, %v3871_v20  ;;  %v761_v49 = vpop.f32.mrf.mxu0 }
 0x220   : > { %v777_v52 = vpop.f32.mrf.mxu1  ;;  %957 = vst.msk [vmem:[#allocation4 + $0x8] sm:$0xf] %vm829_vm1, %v3898_v46  ;;  %v762_v53 = vadd.f32 %v761_v49, %v3873_v21  ;;  %v3908_v57 = vpack.c.bf16 %v760_v47, %v760_v47  ;;  %v3910_v59 = vpack.i.bf16 %v760_v47, %v756_v38 }
 0x221   : > { %v778_v54 = vadd.f32 %v777_v52, %v3873_v21  ;;  %v3079_v22 = vpack.c.bf16 %v776_v48, %v776_v48  ;;  %v765_v55 = vpop.f32.mrf.mxu0 }
 0x222   : > { %v779_v56 = vpop.f32.mrf.mxu1  ;;  %v3912_v60 = vpack.c.bf16 %v762_v53, %v762_v53  ;;  %v766_v61 = vadd.f32 %v765_v55, %v3871_v20  ;;  %833 = vst.msk [vmem:[#allocation2 + $0xc] sm:$0xf] %vm829_vm1, %v3908_v57 }
 0x223   : > { %v3914_v30 = vpack.c.bf16 %v778_v54, %v778_v54  ;;  %v780_v62 = vadd.f32 %v779_v56, %v3871_v20  ;;  %1120 = vrot.lane.b32.xlu1 %v3079_v22, %s3631_s16  ;;  %836 = vst.msk [vmem:[#allocation2 + $0x18] sm:$0xf] %vm829_vm1, %v3079_v22  ;;  %976 = vrot.lane.b32.xlu0 %v3079_v22, %s3632_s17  ;;  %v767_v63 = vpop.f32.mrf.mxu0 }
 0x224   : > { %v781_v0 = vpop.f32.mrf.mxu1  ;;  %958 = vst.msk [vmem:[#allocation4 + $0xc] sm:$0xf] %vm829_vm1, %v3912_v60  ;;  %v768_v1 = vadd.f32 %v767_v63, %v3873_v21  ;;  %v3929_v5 = vpack.c.bf16 %v766_v61, %v766_v61 }
 0x225   : > { %961 = vst.msk [vmem:[#allocation4 + $0x18] sm:$0xf] %vm829_vm1, %v3914_v30  ;;  %v782_v2 = vadd.f32 %v781_v0, %v3873_v21  ;;  %v769_v23 = vpop.f32.mrf.mxu0  ;;  %v3080_v4 = vpack.c.bf16 %v780_v62, %v780_v62  ;;  %v3349_v17 = vpack.i.bf16 %v780_v62, %v776_v48 }
 0x226   : > { %v785_v31 = vpop.f32.mrf.mxu1  ;;  %v3931_v7 = vpack.c.bf16 %v768_v1, %v768_v1  ;;  %v770_v9 = vadd.f32 %v769_v23, %v3871_v20  ;;  %834 = vst.msk [vmem:[#allocation2 + $0x10] sm:$0xf] %vm829_vm1, %v3929_v5 }
 0x227   : > { %v3933_v8 = vpack.c.bf16 %v782_v2, %v782_v2  ;;  %v786_v50 = vadd.f32 %v785_v31, %v3871_v20  ;;  %1252 = vrot.lane.b32.xlu1 %v3073_v27, %s3633_s18  ;;  %3345 = vrot.lane.b32.xlu0 %v3344_v3, %s3634_s20  ;;  %v771_v10 = vpop.f32.mrf.mxu0  ;;  %837 = vst.msk [vmem:[#allocation2 + $0x1c] sm:$0xf] %vm829_vm1, %v3080_v4 }
 0x228   : > { %v787_v11 = vpop.f32.mrf.mxu1  ;;  %959 = vst.msk [vmem:[#allocation4 + $0x10] sm:$0xf] %vm829_vm1, %v3931_v7  ;;  %v772_v41 = vadd.f32 %v771_v10, %v3873_v21  ;;  %v3948_v40 = vpack.c.bf16 %v770_v9, %v770_v9  ;;  %v3950_v14 = vpack.i.bf16 %v770_v9, %v766_v61 }
 0x229   : > { %962 = vst.msk [vmem:[#allocation4 + $0x1c] sm:$0xf] %vm829_vm1, %v3933_v8  ;;  %v788_v12 = vadd.f32 %v787_v11, %v3873_v21  ;;  %v3081_v13 = vpack.c.bf16 %v786_v50, %v786_v50 }
 0x22a   : > { %v789_v51 = vpop.f32.mrf.mxu1  ;;  %v3952_v58 = vpack.c.bf16 %v772_v41, %v772_v41  ;;  %835 = vst.msk [vmem:[#allocation2 + $0x14] sm:$0xf] %vm829_vm1, %v3948_v40 }
 0x22b   : > { %v3954_v15 = vpack.c.bf16 %v788_v12, %v788_v12  ;;  %1264 = vrot.lane.b32.xlu1 %v3079_v22, %s3633_s18  ;;  %838 = vst.msk [vmem:[#allocation2 + $0x20] sm:$0xf] %vm829_vm1, %v3081_v13  ;;  %3355 = vrot.lane.b32.xlu0 %v3344_v3, %s3635_s21 }
 0x22c   : > { %v790_v16 = vpop.f32.mrf.mxu1  ;;  %960 = vst.msk [vmem:[#allocation4 + $0x14] sm:$0xf] %vm829_vm1, %v3952_v58 }
 0x22d   : > { %963 = vst.msk [vmem:[#allocation4 + $0x20] sm:$0xf] %vm829_vm1, %v3954_v15 }
 0x22f   : > { %3350 = vrot.lane.b32.xlu1 %v3349_v17, %s3634_s20  ;;  %3360 = vrot.lane.b32.xlu0 %v3349_v17, %s3635_s21 }
 0x233   : > { %1071 = vrot.lane.b32.xlu1 %v3877_v29, %s3632_s17  ;;  %3370 = vrot.lane.b32.xlu0 %v3349_v17, %s3636_s22 }
 0x237   : > { %1083 = vrot.lane.b32.xlu1 %v3914_v30, %s3632_s17  ;;  %966 = vrot.lane.b32.xlu0 %v3886_v35, %s3632_s17 }
 0x23b   : > { %3365 = vrot.lane.b32.xlu1 %v3344_v3, %s3636_s22  ;;  %978 = vrot.lane.b32.xlu0 %v3080_v4, %s3632_s17 }
 0x23f   : > { %1215 = vrot.lane.b32.xlu1 %v3877_v29, %s3631_s16  ;;  %1254 = vrot.lane.b32.xlu0 %v3886_v35, %s3633_s18 }
 0x243   : > { %3375 = vrot.lane.b32.xlu1 %v3344_v3, %s3637_s23  ;;  %864 = vrot.lane.b32.xlu0 %v786_v50, %s3634_s20 }
 0x247   : > { %3380 = vrot.lane.b32.xlu1 %v3349_v17, %s3637_s23  ;;  %1017 = vrot.lane.b32.xlu0 %v786_v50, %s3635_s21 }
 0x24b   : > { %1227 = vrot.lane.b32.xlu1 %v3914_v30, %s3631_s16  ;;  %968 = vrot.lane.b32.xlu0 %v3896_v43, %s3632_s17 }
 0x24f   : > { %1110 = vrot.lane.b32.xlu1 %v3886_v35, %s3631_s16  ;;  %980 = vrot.lane.b32.xlu0 %v3081_v13, %s3632_s17 }
 0x253   : > { %1122 = vrot.lane.b32.xlu1 %v3080_v4, %s3631_s16  ;;  %1124 = vrot.lane.b32.xlu0 %v3081_v13, %s3631_s16 }
 0x257   : > { %1266 = vrot.lane.b32.xlu1 %v3080_v4, %s3633_s18  ;;  %3390 = vrot.lane.b32.xlu0 %v3910_v59, %s3635_s21 }
 0x25b   : > { %1073 = vrot.lane.b32.xlu1 %v3888_v37, %s3632_s17  ;;  %3395 = vrot.lane.b32.xlu0 %v3910_v59, %s3636_s22 }
 0x25f   : > { %1085 = vrot.lane.b32.xlu1 %v3933_v8, %s3632_s17  ;;  %970 = vrot.lane.b32.xlu0 %v3908_v57, %s3632_s17 }
 0x263   : > { %1161 = vrot.lane.b32.xlu1 %v786_v50, %s3636_s22  ;;  %972 = vrot.lane.b32.xlu0 %v3929_v5, %s3632_s17 }
 0x267   : > { %1217 = vrot.lane.b32.xlu1 %v3888_v37, %s3631_s16  ;;  %3410 = vrot.lane.b32.xlu0 %v3950_v14, %s3635_s21 }
 0x26b   : > { %1305 = vrot.lane.b32.xlu1 %v786_v50, %s3637_s23  ;;  %974 = vrot.lane.b32.xlu0 %v3948_v40, %s3632_s17 }
 0x26f   : > { %1229 = vrot.lane.b32.xlu1 %v3933_v8, %s3631_s16  ;;  %1081 = vrot.lane.b32.xlu0 %v3952_v58, %s3632_s17 }
 0x273   : > { %1112 = vrot.lane.b32.xlu1 %v3896_v43, %s3631_s16 }
 0x277   : > { %1256 = vrot.lane.b32.xlu1 %v3896_v43, %s3633_s18 }
 0x27b   : > { %1268 = vrot.lane.b32.xlu1 %v3081_v13, %s3633_s18 }
 0x27f   : > { %3385 = vrot.lane.b32.xlu1 %v3910_v59, %s3634_s20 }
 0x283   : > { %1075 = vrot.lane.b32.xlu1 %v3898_v46, %s3632_s17 }
 0x287   : > { %1087 = vrot.lane.b32.xlu1 %v3954_v15, %s3632_s17 }
 0x288   : > { %v1109_v18 = vpop.permute.xlu1 %1108  ;;  %v965_v19 = vpop.permute.xlu0 %964 }
 0x289   : > { %1136 = vst.msk [vmem:[#allocation2 + $0x48] sm:$0xf] %vm829_vm1, %v1109_v18  ;;  %992 = vst.msk [vmem:[#allocation2 + $0x24] sm:$0xf] %vm829_vm1, %v965_v19 }
 0x28b   : > { %1219 = vrot.lane.b32.xlu1 %v3898_v46, %s3631_s16 }
 0x28f   : > { %3400 = vrot.lane.b32.xlu1 %v3910_v59, %s3637_s23 }
 0x293   : > { %1231 = vrot.lane.b32.xlu1 %v3954_v15, %s3631_s16 }
 0x295   : > { %v1121_v20 = vpop.permute.xlu1 %1120  ;;  %v977_v21 = vpop.permute.xlu0 %976 }
 0x296   : > { %1142 = vst.msk [vmem:[#allocation2 + $0x60] sm:$0xf] %vm829_vm1, %v1121_v20  ;;  %998 = vst.msk [vmem:[#allocation2 + $0x3c] sm:$0xf] %vm829_vm1, %v977_v21 }
 0x297   : > { %1114 = vrot.lane.b32.xlu1 %v3908_v57, %s3631_s16 }
 0x299   : > { %v1253_v6 = vpop.permute.xlu1 %1252  ;;  %v4042_v24 = vpop.permute.xlu0 %3345 }
 0x29a   : > { %1280 = vst.msk [vmem:[#allocation2 + $0x6c] sm:$0xf] %vm829_vm1, %v1253_v6  ;;  %v3347_v18 = vunpack.i.l.bf16 %v4042_v24  ;;  %v3348_v21 = vunpack.i.h.bf16 %v4042_v24 }
 0x29b   : > { %1258 = vrot.lane.b32.xlu1 %v3908_v57, %s3633_s18 }
 0x29d   : > { %v1265_v25 = vpop.permute.xlu1 %1264  ;;  %v3356_v26 = vpop.permute.xlu0 %3355 }
 0x29e   : > { %1286 = vst.msk [vmem:[#allocation2 + $0x84] sm:$0xf] %vm829_vm1, %v1265_v25  ;;  %v3357_v27 = vunpack.i.l.bf16 %v3356_v26  ;;  %v3358_v33 = vunpack.i.h.bf16 %v3356_v26 }
 0x29f   : > { %1077 = vrot.lane.b32.xlu1 %v3912_v60, %s3632_s17 }
 0x2a0   : > { %1028 = vxpose.xlu0.b32.start [1/9] (short) (narrow) %v3357_v27, 16 }
 0x2a1   : > { %v4049_v28 = vpop.permute.xlu1 %3350  ;;  %v4051_v32 = vpop.permute.xlu0 %3360 }
 0x2a2   : > { %v3362_v12 = vunpack.i.l.bf16 %v4051_v32  ;;  %v3363_v51 = vunpack.i.h.bf16 %v4051_v32 }
 0x2a3   : > { %1221 = vrot.lane.b32.xlu1 %v3912_v60, %s3631_s16 }
 0x2a4   : > { %1029 = vxpose.xlu0.b32.cont [2/9] (short) (narrow) %v3358_v33, 16 }
 0x2a5   : > { %v1072_v34 = vpop.permute.xlu1 %1071  ;;  %v4056_v35 = vpop.permute.xlu0 %3370 }
 0x2a6   : > { %1099 = vst.msk [vmem:[#allocation4 + $0x24] sm:$0xf] %vm829_vm1, %v1072_v34 }
 0x2a7   : > { %1116 = vrot.lane.b32.xlu1 %v3929_v5, %s3631_s16 }
 0x2a9   : > { %v1084_v36 = vpop.permute.xlu1 %1083  ;;  %v967_v38 = vpop.permute.xlu0 %966 }
 0x2aa   : > { %1105 = vst.msk [vmem:[#allocation4 + $0x3c] sm:$0xf] %vm829_vm1, %v1084_v36  ;;  %993 = vst.msk [vmem:[#allocation2 + $0x28] sm:$0xf] %vm829_vm1, %v967_v38 }
 0x2ab   : > { %1260 = vrot.lane.b32.xlu1 %v3929_v5, %s3633_s18 }
 0x2ad   : > { %v4064_v39 = vpop.permute.xlu1 %3365  ;;  %v979_v42 = vpop.permute.xlu0 %978 }
 0x2ae   : > { %999 = vst.msk [vmem:[#allocation2 + $0x40] sm:$0xf] %vm829_vm1, %v979_v42  ;;  %v3367_v16 = vunpack.i.l.bf16 %v4064_v39  ;;  %v3368_v19 = vunpack.i.h.bf16 %v4064_v39 }
 0x2af   : > { %3405 = vrot.lane.b32.xlu1 %v3950_v14, %s3634_s20 }
 0x2b1   : > { %v1216_v43 = vpop.permute.xlu1 %1215  ;;  %v1255_v44 = vpop.permute.xlu0 %1254 }
 0x2b2   : > { %1243 = vst.msk [vmem:[#allocation4 + $0x48] sm:$0xf] %vm829_vm1, %v1216_v43  ;;  %1281 = vst.msk [vmem:[#allocation2 + $0x70] sm:$0xf] %vm829_vm1, %v1255_v44 }
 0x2b3   : > { %1079 = vrot.lane.b32.xlu1 %v3931_v7, %s3632_s17 }
 0x2b5   : > { %v4073_v45 = vpop.permute.xlu1 %3375  ;;  %v4075_v47 = vpop.permute.xlu0 %864 }
 0x2b7   : > { %3415 = vrot.lane.b32.xlu1 %v3950_v14, %s3636_s22 }
 0x2b9   : > { %v4079_v48 = vpop.permute.xlu1 %3380  ;;  %v1018_v49 = vpop.permute.xlu0 %1017 }
 0x2bb   : > { %1223 = vrot.lane.b32.xlu1 %v3931_v7, %s3631_s16 }
 0x2bd   : > { %v1228_v52 = vpop.permute.xlu1 %1227  ;;  %v969_v53 = vpop.permute.xlu0 %968 }
 0x2be   : > { %1249 = vst.msk [vmem:[#allocation4 + $0x60] sm:$0xf] %vm829_vm1, %v1228_v52  ;;  %994 = vst.msk [vmem:[#allocation2 + $0x2c] sm:$0xf] %vm829_vm1, %v969_v53 }
 0x2bf   : > { %3420 = vrot.lane.b32.xlu1 %v3950_v14, %s3637_s23 }
 0x2c1   : > { %v1111_v54 = vpop.permute.xlu1 %1110  ;;  %v981_v22 = vpop.permute.xlu0 %980 }
 0x2c2   : > { %1137 = vst.msk [vmem:[#allocation2 + $0x4c] sm:$0xf] %vm829_vm1, %v1111_v54  ;;  %1000 = vst.msk [vmem:[#allocation2 + $0x44] sm:$0xf] %vm829_vm1, %v981_v22 }
 0x2c3   : > { %1118 = vrot.lane.b32.xlu1 %v3948_v40, %s3631_s16 }
 0x2c5   : > { %v1123_v55 = vpop.permute.xlu1 %1122  ;;  %v1125_v56 = vpop.permute.xlu0 %1124 }
 0x2c6   : > { %1143 = vst.msk [vmem:[#allocation2 + $0x64] sm:$0xf] %vm829_vm1, %v1123_v55  ;;  %1144 = vst.msk [vmem:[#allocation2 + $0x68] sm:$0xf] %vm829_vm1, %v1125_v56  ;;  %v3352_v55 = vunpack.i.l.bf16 %v4049_v28 }
 0x2c7   : > { %1262 = vrot.lane.b32.xlu1 %v3948_v40, %s3633_s18 }
 0x2c9   : > { %v1267_v57 = vpop.permute.xlu1 %1266  ;;  %v3391_v59 = vpop.permute.xlu0 %3390 }
 0x2ca   : > { %1287 = vst.msk [vmem:[#allocation2 + $0x88] sm:$0xf] %vm829_vm1, %v1267_v57  ;;  %v3392_v61 = vunpack.i.l.bf16 %v3391_v59  ;;  %v3393_v0 = vunpack.i.h.bf16 %v3391_v59  ;;  %v3353_v59 = vunpack.i.h.bf16 %v4049_v28 }
 0x2cb   : > { %1225 = vrot.lane.b32.xlu1 %v3952_v58, %s3631_s16 }
 0x2cc   : > { %1030 = vxpose.xlu0.b32.cont [3/9] (short) (narrow) %v3392_v61, 16 }
 0x2cd   : > { %v1074_v62 = vpop.permute.xlu1 %1073  ;;  %v3396_v63 = vpop.permute.xlu0 %3395 }
 0x2ce   : > { %1100 = vst.msk [vmem:[#allocation4 + $0x28] sm:$0xf] %vm829_vm1, %v1074_v62  ;;  %v3397_v6 = vunpack.i.l.bf16 %v3396_v63  ;;  %v3398_v27 = vunpack.i.h.bf16 %v3396_v63  ;;  %v3372_v63 = vunpack.i.l.bf16 %v4056_v35 }
 0x2d0   : > { %1031 = vxpose.xlu0.b32.cont [4/9] (short) (narrow) %v3393_v0, 16 }
 0x2d1   : > { %v1086_v1 = vpop.permute.xlu1 %1085  ;;  %v971_v2 = vpop.permute.xlu0 %970 }
 0x2d2   : > { %1106 = vst.msk [vmem:[#allocation4 + $0x40] sm:$0xf] %vm829_vm1, %v1086_v1  ;;  %995 = vst.msk [vmem:[#allocation2 + $0x30] sm:$0xf] %vm829_vm1, %v971_v2  ;;  %v3373_v1 = vunpack.i.h.bf16 %v4056_v35  ;;  %v3377_v2 = vunpack.i.l.bf16 %v4073_v45 }
 0x2d5   : > { %v4101_v23 = vpop.permute.xlu1 %1161  ;;  %v973_v31 = vpop.permute.xlu0 %972 }
 0x2d6   : > { %996 = vst.msk [vmem:[#allocation2 + $0x34] sm:$0xf] %vm829_vm1, %v973_v31  ;;  %v3378_v31 = vunpack.i.h.bf16 %v4073_v45 }
 0x2d9   : > { %v1218_v3 = vpop.permute.xlu1 %1217  ;;  %v3411_v4 = vpop.permute.xlu0 %3410 }
 0x2da   : > { %1244 = vst.msk [vmem:[#allocation4 + $0x4c] sm:$0xf] %vm829_vm1, %v1218_v3  ;;  %v3412_v5 = vunpack.i.l.bf16 %v3411_v4  ;;  %v3413_v10 = vunpack.i.h.bf16 %v3411_v4 }
 0x2dc   : > { %1032 = vxpose.xlu0.b32.cont [5/9] (short) (narrow) %v3412_v5, 16 }
 0x2dd   : > { %v4105_v9 = vpop.permute.xlu1 %1305  ;;  %v975_v50 = vpop.permute.xlu0 %974 }
 0x2de   : > { %997 = vst.msk [vmem:[#allocation2 + $0x38] sm:$0xf] %vm829_vm1, %v975_v50 }
 0x2e0   : > { %1033 = vxpose.xlu0.b32.cont [6/9] (short) (narrow) %v3413_v10, 16 }
 0x2e1   : > { %v1230_v11 = vpop.permute.xlu1 %1229  ;;  %v1082_v41 = vpop.permute.xlu0 %1081 }
 0x2e2   : > { %1250 = vst.msk [vmem:[#allocation4 + $0x64] sm:$0xf] %vm829_vm1, %v1230_v11  ;;  %1104 = vst.msk [vmem:[#allocation4 + $0x38] sm:$0xf] %vm829_vm1, %v1082_v41  ;;  %v3383_v41 = vunpack.i.h.bf16 %v4079_v48 }
 0x2e4   : > { %1034 = vxpose.xlu0.b32.cont [7/9] (short) (narrow) %v3362_v12, 16 }
 0x2e5   : > { %v1113_v13 = vpop.permute.xlu1 %1112 }
 0x2e6   : > { %1138 = vst.msk [vmem:[#allocation2 + $0x50] sm:$0xf] %vm829_vm1, %v1113_v13 }
 0x2e8   : > { %1035 = vxpose.xlu0.b32.cont [8/9] (short) (narrow) %v3363_v51, 16 }
 0x2e9   : > { %v1257_v40 = vpop.permute.xlu1 %1256 }
 0x2ea   : > { %1282 = vst.msk [vmem:[#allocation2 + $0x74] sm:$0xf] %vm829_vm1, %v1257_v40 }
 0x2ec   : > { %1036 = vxpose.xlu0.b32.end [9/9] (short) (narrow) %v1018_v49, 16 }
 0x2ed   : > { %v1269_v14 = vpop.permute.xlu1 %1268 }
 0x2ee   : > { %1288 = vst.msk [vmem:[#allocation2 + $0x8c] sm:$0xf] %vm829_vm1, %v1269_v14 }
 0x2f0   : > { %1172 = vxpose.xlu0.b32.start [1/9] (short) (narrow) %v3367_v16, 16 }
 0x2f1   : > { %v3386_v17 = vpop.permute.xlu1 %3385 }
 0x2f2   : > { %v3387_v26 = vunpack.i.l.bf16 %v3386_v17  ;;  %v3388_v33 = vunpack.i.h.bf16 %v3386_v17 }
 0x2f4   : > { %875 = vxpose.xlu1.b32.start [1/9] (short) (narrow) %v3347_v18, 16  ;;  %1173 = vxpose.xlu0.b32.cont [2/9] (short) (narrow) %v3368_v19, 16 }
 0x2f5   : > { %v1076_v20 = vpop.permute.xlu1 %1075 }
 0x2f6   : > { %1101 = vst.msk [vmem:[#allocation4 + $0x2c] sm:$0xf] %vm829_vm1, %v1076_v20 }
 0x2f8   : > { %876 = vxpose.xlu1.b32.cont [2/9] (short) (narrow) %v3348_v21, 16  ;;  %1174 = vxpose.xlu0.b32.cont [3/9] (short) (narrow) %v3397_v6, 16 }
 0x2f9   : > { %v1088_v25 = vpop.permute.xlu1 %1087 }
 0x2fa   : > { %1107 = vst.msk [vmem:[#allocation4 + $0x44] sm:$0xf] %vm829_vm1, %v1088_v25 }
 0x2fc   : > { %877 = vxpose.xlu1.b32.cont [3/9] (short) (narrow) %v3387_v26, 16  ;;  %1175 = vxpose.xlu0.b32.cont [4/9] (short) (narrow) %v3398_v27, 16 }
 0x2fd   : > { %v1220_v32 = vpop.permute.xlu1 %1219 }
 0x2fe   : > { %1245 = vst.msk [vmem:[#allocation4 + $0x50] sm:$0xf] %vm829_vm1, %v1220_v32 }
 0x300   : > { %878 = vxpose.xlu1.b32.cont [4/9] (short) (narrow) %v3388_v33, 16 }
 0x301   : > { %v3401_v34 = vpop.permute.xlu1 %3400 }
 0x302   : > { %v3402_v4 = vunpack.i.l.bf16 %v3401_v34  ;;  %v3403_v35 = vunpack.i.h.bf16 %v3401_v34 }
 0x305   : > { %v1232_v36 = vpop.permute.xlu1 %1231 }
 0x306   : > { %1251 = vst.msk [vmem:[#allocation4 + $0x68] sm:$0xf] %vm829_vm1, %v1232_v36 }
 0x309   : > { %v1115_v24 = vpop.permute.xlu1 %1114 }
 0x30a   : > { %1139 = vst.msk [vmem:[#allocation2 + $0x54] sm:$0xf] %vm829_vm1, %v1115_v24 }
 0x30d   : > { %v1259_v38 = vpop.permute.xlu1 %1258 }
 0x30e   : > { %1283 = vst.msk [vmem:[#allocation2 + $0x78] sm:$0xf] %vm829_vm1, %v1259_v38 }
 0x311   : > { %v1078_v39 = vpop.permute.xlu1 %1077 }
 0x312   : > { %1102 = vst.msk [vmem:[#allocation4 + $0x30] sm:$0xf] %vm829_vm1, %v1078_v39 }
 0x315   : > { %v1222_v42 = vpop.permute.xlu1 %1221 }
 0x316   : > { %1246 = vst.msk [vmem:[#allocation4 + $0x54] sm:$0xf] %vm829_vm1, %v1222_v42 }
 0x319   : > { %v1117_v43 = vpop.permute.xlu1 %1116 }
 0x31a   : > { %1140 = vst.msk [vmem:[#allocation2 + $0x58] sm:$0xf] %vm829_vm1, %v1117_v43 }
 0x31d   : > { %v1261_v44 = vpop.permute.xlu1 %1260 }
 0x31e   : > { %1284 = vst.msk [vmem:[#allocation2 + $0x7c] sm:$0xf] %vm829_vm1, %v1261_v44 }
 0x321   : > { %v3406_v49 = vpop.permute.xlu1 %3405 }
 0x322   : > { %v3407_v52 = vunpack.i.l.bf16 %v3406_v49  ;;  %v3408_v54 = vunpack.i.h.bf16 %v3406_v49 }
 0x324   : > { %879 = vxpose.xlu1.b32.cont [5/9] (short) (narrow) %v3407_v52, 16 }
 0x325   : > { %v1080_v53 = vpop.permute.xlu1 %1079 }
 0x326   : > { %1103 = vst.msk [vmem:[#allocation4 + $0x34] sm:$0xf] %vm829_vm1, %v1080_v53 }
 0x328   : > { %880 = vxpose.xlu1.b32.cont [6/9] (short) (narrow) %v3408_v54, 16 }
 0x329   : > { %v3416_v22 = vpop.permute.xlu1 %3415 }
 0x32a   : > { %v3417_v56 = vunpack.i.l.bf16 %v3416_v22  ;;  %v3418_v61 = vunpack.i.h.bf16 %v3416_v22 }
 0x32c   : > { %1176 = vxpose.xlu0.b32.cont [5/9] (short) (narrow) %v3417_v56, 16  ;;  %881 = vxpose.xlu1.b32.cont [7/9] (short) (narrow) %v3352_v55, 16 }
 0x32d   : > { %v1224_v57 = vpop.permute.xlu1 %1223 }
 0x32e   : > { %1247 = vst.msk [vmem:[#allocation4 + $0x58] sm:$0xf] %vm829_vm1, %v1224_v57 }
 0x330   : > { %1177 = vxpose.xlu0.b32.cont [6/9] (short) (narrow) %v3418_v61, 16  ;;  %882 = vxpose.xlu1.b32.cont [8/9] (short) (narrow) %v3353_v59, 16 }
 0x331   : > { %v3421_v62 = vpop.permute.xlu1 %3420 }
 0x332   : > { %v3423_v50 = vunpack.i.h.bf16 %v3421_v62 }
 0x334   : > { %1178 = vxpose.xlu0.b32.cont [7/9] (short) (narrow) %v3372_v63, 16  ;;  %883 = vxpose.xlu1.b32.end [9/9] (short) (narrow) %v4075_v47, 16  ;;  %v3422_v47 = vunpack.i.l.bf16 %v3421_v62 }
 0x335   : > { %v1119_v0 = vpop.permute.xlu1 %1118 }
 0x336   : > { %1141 = vst.msk [vmem:[#allocation2 + $0x5c] sm:$0xf] %vm829_vm1, %v1119_v0 }
 0x338   : > { %1179 = vxpose.xlu0.b32.cont [8/9] (short) (narrow) %v3373_v1, 16  ;;  %1316 = vxpose.xlu1.b32.start [1/9] (short) (narrow) %v3377_v2, 16 }
 0x339   : > { %v1263_v28 = vpop.permute.xlu1 %1262 }
 0x33a   : > { %1285 = vst.msk [vmem:[#allocation2 + $0x80] sm:$0xf] %vm829_vm1, %v1263_v28 }
 0x33c   : > { %1180 = vxpose.xlu0.b32.end [9/9] (short) (narrow) %v4101_v23, 16  ;;  %1317 = vxpose.xlu1.b32.cont [2/9] (short) (narrow) %v3378_v31, 16  ;;  %v3382_v23 = vunpack.i.l.bf16 %v4079_v48 }
 0x33d   : > { %v1226_v3 = vpop.permute.xlu1 %1225 }
 0x33e   : > { %1248 = vst.msk [vmem:[#allocation4 + $0x5c] sm:$0xf] %vm829_vm1, %v1226_v3 }
 0x340   : > { %1318 = vxpose.xlu1.b32.cont [3/9] (short) (narrow) %v3402_v4, 16 }
 0x344   : > { %1319 = vxpose.xlu1.b32.cont [4/9] (short) (narrow) %v3403_v35, 16 }
 0x348   : > { %1320 = vxpose.xlu1.b32.cont [5/9] (short) (narrow) %v3422_v47, 16  ;;  %v1044_v5 = vpop.trf.xlu0 }
 0x349   : > { %v3093_v10 = vpack.c.bf16 %v1044_v5, %v1044_v5 }
 0x34b   : > { %1069 = vst.msk [vmem:[#allocation3 + $0x8] sm:$0xf] %vm915_vm2, %v3093_v10 }
 0x34c   : > { %1321 = vxpose.xlu1.b32.cont [6/9] (short) (narrow) %v3423_v50, 16  ;;  %v1045_v45 = vpop.trf.xlu0 }
 0x34d   : > { %v3094_v11 = vpack.c.bf16 %v1045_v45, %v1045_v45 }
 0x34f   : > { %1070 = vst.msk [vmem:[#allocation3 + $0xc] sm:$0xf] %vm915_vm2, %v3094_v11 }
 0x350   : > { %1322 = vxpose.xlu1.b32.cont [7/9] (short) (narrow) %v3382_v23, 16 }
 0x354   : > { %1323 = vxpose.xlu1.b32.cont [8/9] (short) (narrow) %v3383_v41, 16 }
 0x358   : > { %1324 = vxpose.xlu1.b32.end [9/9] (short) (narrow) %v4105_v9, 16 }
 0x365   : > { %1359 = vrot.lane.b32.xlu0 %v3877_v29, %s3633_s18 }
 0x369   : > { %1361 = vrot.lane.b32.xlu0 %v3888_v37, %s3633_s18 }
 0x36d   : > { %1363 = vrot.lane.b32.xlu0 %v3898_v46, %s3633_s18 }
 0x371   : > { %1365 = vrot.lane.b32.xlu0 %v3912_v60, %s3633_s18 }
 0x375   : > { %1367 = vrot.lane.b32.xlu0 %v3931_v7, %s3633_s18 }
 0x379   : > { %1369 = vrot.lane.b32.xlu0 %v3952_v58, %s3633_s18 }
 0x37d   : > { %1371 = vrot.lane.b32.xlu0 %v3914_v30, %s3633_s18 }
 0x381   : > { %1373 = vrot.lane.b32.xlu0 %v3933_v8, %s3633_s18 }
 0x385   : > { %1375 = vrot.lane.b32.xlu0 %v3954_v15, %s3633_s18 }
 0x390   : > { %v891_v29 = vpop.trf.xlu1 }
 0x391   : > { %v3082_v37 = vpack.c.bf16 %v891_v29, %v891_v29 }
 0x393   : > { %916 = vst.msk [vmem:[#allocation3] sm:$0xf] %vm915_vm2, %v3082_v37 }
 0x394   : > { %v892_v46 = vpop.trf.xlu1 }
 0x395   : > { %v3083_v60 = vpack.c.bf16 %v892_v46, %v892_v46 }
 0x397   : > { %917 = vst.msk [vmem:[#allocation3 + $0x4] sm:$0xf] %vm915_vm2, %v3083_v60 }
 0x398   : > { %v1188_v7 = vpop.trf.xlu0 }
 0x399   : > { %v3095_v48 = vpack.c.bf16 %v1188_v7, %v1188_v7 }
 0x39b   : > { %1213 = vst.msk [vmem:[#allocation3 + $0x10] sm:$0xf] %vm915_vm2, %v3095_v48 }
 0x39c   : > { %v1189_v58 = vpop.trf.xlu0 }
 0x39d   : > { %v3096_v30 = vpack.c.bf16 %v1189_v58, %v1189_v58 }
 0x39f   : > { %1214 = vst.msk [vmem:[#allocation3 + $0x14] sm:$0xf] %vm915_vm2, %v3096_v30 }
 0x3b4   : > { %v1332_v8 = vpop.trf.xlu1 }
 0x3b5   : > { %v3097_v9 = vpack.c.bf16 %v1332_v8, %v1332_v8 }
 0x3b7   : > { %1357 = vst.msk [vmem:[#allocation3 + $0x18] sm:$0xf] %vm915_vm2, %v3097_v9 }
 0x3b8   : > { %v1333_v15 = vpop.trf.xlu1 }
 0x3b9   : > { %v3098_v12 = vpack.c.bf16 %v1333_v15, %v1333_v15 }
 0x3bb   : > { %1358 = vst.msk [vmem:[#allocation3 + $0x1c] sm:$0xf] %vm915_vm2, %v3098_v12 }
 0x3d7   : > { %v1360_v13 = vpop.permute.xlu0 %1359 }
 0x3d8   : > { %1387 = vst.msk [vmem:[#allocation4 + $0x6c] sm:$0xf] %vm829_vm1, %v1360_v13 }
 0x3db   : > { %v1362_v51 = vpop.permute.xlu0 %1361 }
 0x3dc   : > { %1388 = vst.msk [vmem:[#allocation4 + $0x70] sm:$0xf] %vm829_vm1, %v1362_v51 }
 0x3df   : > { %v1364_v40 = vpop.permute.xlu0 %1363 }
 0x3e0   : > { %1389 = vst.msk [vmem:[#allocation4 + $0x74] sm:$0xf] %vm829_vm1, %v1364_v40 }
 0x3e3   : > { %v1366_v14 = vpop.permute.xlu0 %1365 }
 0x3e4   : > { %1390 = vst.msk [vmem:[#allocation4 + $0x78] sm:$0xf] %vm829_vm1, %v1366_v14 }
 0x3e7   : > { %v1368_v16 = vpop.permute.xlu0 %1367 }
 0x3e8   : > { %1391 = vst.msk [vmem:[#allocation4 + $0x7c] sm:$0xf] %vm829_vm1, %v1368_v16 }
 0x3eb   : > { %v1370_v17 = vpop.permute.xlu0 %1369 }
 0x3ec   : > { %1392 = vst.msk [vmem:[#allocation4 + $0x80] sm:$0xf] %vm829_vm1, %v1370_v17 }
 0x3ef   : > { %v1372_v18 = vpop.permute.xlu0 %1371 }
 0x3f0   : > { %1393 = vst.msk [vmem:[#allocation4 + $0x84] sm:$0xf] %vm829_vm1, %v1372_v18 }
 0x3f3   : > { %v1374_v19 = vpop.permute.xlu0 %1373 }
 0x3f4   : > { %1394 = vst.msk [vmem:[#allocation4 + $0x88] sm:$0xf] %vm829_vm1, %v1374_v19 }
 0x3f7   : > { %v1376_v20 = vpop.permute.xlu0 %1375 }
 0x3f8   : > { %1395 = vst.msk [vmem:[#allocation4 + $0x8c] sm:$0xf] %vm829_vm1, %v1376_v20 }
 0x3f9 PF: > { %v3454_v21 = vld [vmem:[#allocation3] sm:$0xff]   ;;  %s1396_s24 = smul.u32 24, %s3612_s25  ;;  %v3455_v6 = vld [vmem:[#allocation3 + $0x8] sm:$0xff]   ;;  %vm1439_vm3 = vcmask 130048   ;;  %v3460_v25 = vld [vmem:[#allocation3 + $0x10] sm:$0xff]   ;;  %v1698_v42 = vlaneseq  ;;  %vm1715_vm5 = vcmask 588800  }
 0x3fa   : > { %3185 = vmatprep.subr.bf16.mxu0 %v3454_v21  ;;  %3191 = vmatprep.subr.bf16.mxu1 %v3455_v6  ;;  %v3461_v26 = vld [vmem:[#allocation3 + $0x18] sm:$0xff]   ;;  %vm1925_vm6 = vcmask 1043456   ;;  %vm2242_vm7 = vcmask 125952   ;;  %s3638_s17 = smov 16   ;;  %s3640_s18 = smov 48   ;;  %vm2265_vm8 = vcmask 257152  }
 0x3fb   : > { %s1401_s26 = sshra.s32 %s1396_s24, 3  ;;  %3186 = vmatpush3.bf16.msra.mxu0 %v3454_v21  ;;  %3192 = vmatpush3.bf16.msra.mxu1 %v3455_v6  ;;  %v1699_v43 = vand.u32 127, %v1698_v42  ;;  %vm2288_vm9 = vcmask 388352   ;;  %vm2311_vm10 = vcmask 519552   ;;  %vm2365_vm11 = vcmask 523264   ;;  %s1397_s20 = scalar_lea.vmem %s3748_s19, %s1396_s24 }
 0x3fc   : > { %s2968_s15 = sshll.u32 %s1401_s26, 2  ;;  %3197 = vmatprep.subr.bf16.mxu0 %v3460_v25  ;;  %3203 = vmatprep.subr.bf16.mxu1 %v3461_v26 }
 0x3fd   : > { %s1404_s16 = scalar_lea.vmem [#allocation2], %s2968_s15  ;;  %vm1700_vm4 = vcmp.lt.s32.totalorder %v1699_v43, 65  ;;  %s3639_s15 = smov 32  }
 0x3fe   : > { %v3456_v27 = vld [vmem:[%s1404_s16] sm:$0xff]   ;;  %v3458_v33 = vld [vmem:[%s1404_s16 + $0x8] ss:$0 sps:$4 sm:$0xff]   ;;  %v3459_v34 = vld [vmem:[%s1404_s16 + $0x2c] ss:$0 sps:$4 sm:$0xff]  }
 0x3ff   : > { %v3457_v32 = vld [vmem:[%s1404_s16 + $0x24] sm:$0xff]   ;;  %3187 = vmatprep.mubr.msk.bf16.mxu0 %vm1439_vm3, %v3456_v27  ;;  %v3463_v24 = vld [vmem:[%s1404_s16 + $0x6c] sm:$0xff]   ;;  %v3465_v39 = vld [vmem:[%s1404_s16 + $0x74] ss:$0 sps:$4 sm:$0xff]  }
 0x400   : > { %3193 = vmatprep.mubr.msk.bf16.mxu1 %vm1439_vm3, %v3457_v32  ;;  %3188 = vmatmul.mubr.msk.bf16.vlgmr.msra.gmra.mxu0 %vm1439_vm3, %v3458_v33  ;;  %v3462_v36 = vld [vmem:[%s1404_s16 + $0x48] sm:$0xff]   ;;  %v3464_v38 = vld [vmem:[%s1404_s16 + $0x50] ss:$0 sps:$4 sm:$0xff]  }
 0x401   : > { %3194 = vmatmul.mubr.msk.bf16.vlgmr.msra.gmra.mxu1 %vm1439_vm3, %v3459_v34  ;;  %3198 = vmatpush3.bf16.msra.mxu0 %v3460_v25 }
 0x402   : > { %3204 = vmatpush3.bf16.msra.mxu1 %v3461_v26  ;;  %3199 = vmatprep.mubr.msk.bf16.mxu0 %vm1439_vm3, %v3462_v36 }
 0x403   : > { %3205 = vmatprep.mubr.msk.bf16.mxu1 %vm1439_vm3, %v3463_v24 }
 0x408   : > { %3200 = vmatmul.mubr.msk.bf16.vlgmr.msra.gmra.mxu0 %vm1439_vm3, %v3464_v38 }
 0x409   : > { %3206 = vmatmul.mubr.msk.bf16.vlgmr.msra.gmra.mxu1 %vm1439_vm3, %v3465_v39 }
 0x4c0   : > { %v3189_v44 = vpop.f32.mrf.mxu0 }
 0x4c1   : > { %v1705_v49 = vsel %vm1700_vm4, %v3189_v44, -1e+30  ;;  %v3195_v52 = vpop.f32.mrf.mxu1 }
 0x4c2   : > { %v1480_v53 = vpop.f32.mrf.mxu0  ;;  %v1722_v54 = vsel %vm1715_vm5, %v1705_v49, -inf  ;;  %v1708_v0 = vsel %vm1700_vm4, %v3195_v52, -1e+30 }
 0x4c3   : > { %v1703_v22 = vsel %vm1700_vm4, %v1480_v53, -1e+30  ;;  %v1548_v55 = vpop.f32.mrf.mxu1  ;;  %1723 = vmax.xlane.f32.xlu1 %v1722_v54  ;;  %v1731_v35 = vsel %vm1715_vm5, %v1708_v0, -inf }
 0x4c4   : > { %v1706_v56 = vsel %vm1700_vm4, %v1548_v55, -1e+30  ;;  %v3190_v57 = vpop.f32.mrf.mxu0  ;;  %v1716_v59 = vsel %vm1715_vm5, %v1703_v22, -inf }
 0x4c5   : > { %v3196_v61 = vpop.f32.mrf.mxu1  ;;  %1717 = vmax.xlane.f32.xlu0 %v1716_v59  ;;  %v1725_v63 = vsel %vm1715_vm5, %v1706_v56, -inf }
 0x4c6   : > { %v1483_v62 = vpop.f32.mrf.mxu0 }
 0x4c7   : > { %v1704_v1 = vsel %vm1700_vm4, %v1483_v62, -1e+30  ;;  %v1551_v2 = vpop.f32.mrf.mxu1  ;;  %1726 = vmax.xlane.f32.xlu1 %v1725_v63 }
 0x4c8   : > { %v1719_v28 = vsel %vm1715_vm5, %v1704_v1, -inf  ;;  %v3201_v31 = vpop.f32.mrf.mxu0  ;;  %v1707_v3 = vsel %vm1700_vm4, %v1551_v2, -1e+30 }
 0x4c9   : > { %1720 = vmax.xlane.f32.xlu0 %v1719_v28  ;;  %v3207_v4 = vpop.f32.mrf.mxu1  ;;  %v1711_v5 = vsel %vm1700_vm4, %v3201_v31, -1e+30  ;;  %v1728_v45 = vsel %vm1715_vm5, %v1707_v3, -inf }
 0x4ca   : > { %v1616_v47 = vpop.f32.mrf.mxu0  ;;  %v1740_v37 = vsel %vm1715_vm5, %v1711_v5, -inf  ;;  %v1714_v58 = vsel %vm1700_vm4, %v3207_v4, -1e+30 }
 0x4cb   : > { %1732 = vmax.xlane.f32.xlu1 %v1731_v35  ;;  %v1684_v50 = vpop.f32.mrf.mxu1  ;;  %v1709_v46 = vsel %vm1700_vm4, %v1616_v47, -1e+30  ;;  %v1749_v9 = vsel %vm1715_vm5, %v1714_v58, -inf }
 0x4cc   : > { %v1712_v10 = vsel %vm1700_vm4, %v1684_v50, -1e+30  ;;  %v3202_v23 = vpop.f32.mrf.mxu0  ;;  %v1734_v30 = vsel %vm1715_vm5, %v1709_v46, -inf }
 0x4cd   : > { %1729 = vmax.xlane.f32.xlu0 %v1728_v45  ;;  %v1743_v11 = vsel %vm1715_vm5, %v1712_v10, -inf  ;;  %v3208_v41 = vpop.f32.mrf.mxu1 }
 0x4ce   : > { %v1619_v29 = vpop.f32.mrf.mxu0 }
 0x4cf   : > { %1744 = vmax.xlane.f32.xlu1 %v1743_v11  ;;  %v1710_v60 = vsel %vm1700_vm4, %v1619_v29, -1e+30  ;;  %v1687_v48 = vpop.f32.mrf.mxu1 }
 0x4d0   : > { %v1737_v7 = vsel %vm1715_vm5, %v1710_v60, -inf  ;;  %v1713_v8 = vsel %vm1700_vm4, %v1687_v48, -1e+30  ;;  %v3467_v48 = vld [vmem:[#allocation4 + $0x44] ss:$0 sps:$4 sm:$0xff]  }
 0x4d1   : > { %1741 = vmax.xlane.f32.xlu0 %v1740_v37  ;;  %v1746_v15 = vsel %vm1715_vm5, %v1713_v8, -inf  ;;  %v3466_v37 = vld [vmem:[#allocation4 + $0x20] ss:$0 sps:$4 sm:$0xff]   ;;  %3286 = vmatprep.subr.msk.bf16.mxu1 %vm1925_vm6, %v3467_v48 }
 0x4d2   : > { %3285 = vmatprep.subr.msk.bf16.mxu0 %vm1925_vm6, %v3466_v37 }
 0x4d3   : > { %1738 = vmax.xlane.f32.xlu1 %v1737_v7  ;;  %v1927_v7 = vsel %vm1925_vm6, %v3466_v37, 0 }
 0x4d4   : > { %3210 = vmatpush3.bf16.msra.mxu0 %v1927_v7 }
 0x4d5   : > { %1735 = vmax.xlane.f32.xlu0 %v1734_v30 }
 0x4d7   : > { %1750 = vmax.xlane.f32.xlu1 %v1749_v9 }
 0x4d9   : > { %1747 = vmax.xlane.f32.xlu0 %v1746_v15  ;;  %v2011_v15 = vsel %vm1925_vm6, %v3467_v48, 0 }
 0x4da   : > { %3224 = vmatpush3.bf16.msra.mxu1 %v2011_v15  ;;  %v3484_v15 = vld [vmem:[#allocation4 + $0x48] sm:$0xff]  }
 0x54c   : > { %v1724_v12 = vpop.xlane.xlu1 %1723 }
 0x54d   : > { %v1754_v13 = vsub.f32 %v1705_v49, %v1724_v12 }
 0x54e   : > { %v1718_v51 = vpop.xlane.xlu0 %1717 }
 0x54f   : > { %v1768_v40 = vmul.f32 1.442695, %v1754_v13  ;;  %v1752_v14 = vsub.f32 %v1703_v22, %v1718_v51  ;;  %v3469_v13 = vld [vmem:[#allocation4 + $0x3c] sm:$0xff]  }
 0x550   : > { %v1727_v16 = vpop.xlane.xlu1 %1726  ;;  %3225 = vmatprep.subr.bf16.mxu1 %v3469_v13 }
 0x551   : > { %3520 = vpow2.f32 %v1768_v40  ;;  %v1764_v17 = vmul.f32 1.442695, %v1752_v14  ;;  %v1755_v18 = vsub.f32 %v1706_v56, %v1727_v16  ;;  %v3470_v40 = vld [vmem:[#allocation4 + $0x10] sm:$0xff]   ;;  %3226 = vmatpush3.bf16.msra.mxu1 %v3469_v13  ;;  %v3472_v16 = vld [vmem:[#allocation4 + $0x8] sm:$0xff]  }
 0x552   : > { %v1721_v19 = vpop.xlane.xlu0 %1720  ;;  %v3471_v14 = vld [vmem:[#allocation4 + $0x34] sm:$0xff]  }
 0x553   : > { %3522 = vpow2.f32 %v1764_v17  ;;  %v1770_v20 = vmul.f32 1.442695, %v1755_v18  ;;  %v1753_v21 = vsub.f32 %v1704_v1, %v1721_v19  ;;  %3227 = vmatprep.subr.bf16.mxu1 %v3471_v14  ;;  %v3473_v17 = vld [vmem:[#allocation4 + $0x2c] sm:$0xff]   ;;  %v3474_v18 = vld [vmem:[#allocation4] sm:$0xff]  }
 0x554   : > { %v1733_v6 = vpop.xlane.xlu1 %1732  ;;  %v3475_v19 = vld [vmem:[#allocation4 + $0x24] sm:$0xff]  }
 0x555   : > { %3524 = vpow2.f32 %v1770_v20  ;;  %v1766_v25 = vmul.f32 1.442695, %v1753_v21  ;;  %v1757_v26 = vsub.f32 %v1708_v0, %v1733_v6  ;;  %3228 = vmatpush3.bf16.msra.mxu1 %v3471_v14  ;;  %v3476_v20 = vld [vmem:[#allocation4 + $0x68] ss:$0 sps:$4 sm:$0xff]   ;;  %v3477_v6 = vld [vmem:[#allocation4 + $0x8c] ss:$0 sps:$4 sm:$0xff]  }
 0x556   : > { %v1730_v27 = vpop.xlane.xlu0 %1729  ;;  %3229 = vmatprep.subr.bf16.mxu1 %v3473_v17  ;;  %v2095_v21 = vsel %vm1925_vm6, %v3476_v20, 0 }
 0x557   : > { %3526 = vpow2.f32 %v1766_v25  ;;  %v1774_v32 = vmul.f32 1.442695, %v1757_v26  ;;  %v1756_v33 = vsub.f32 %v1707_v3, %v1730_v27  ;;  %v2179_v25 = vsel %vm1925_vm6, %v3477_v6, 0 }
 0x558   : > { %v1745_v34 = vpop.xlane.xlu1 %1744 }
 0x559   : > { %v1772_v36 = vmul.f32 1.442695, %v1756_v33  ;;  %v1761_v24 = vsub.f32 %v1712_v10, %v1745_v34  ;;  %3528 = vpow2.f32 %v1774_v32  ;;  %3230 = vmatpush3.bf16.msra.mxu1 %v3473_v17 }
 0x55a   : > { %v1742_v38 = vpop.xlane.xlu0 %1741  ;;  %3231 = vmatprep.subr.bf16.mxu1 %v3475_v19 }
 0x55b   : > { %3530 = vpow2.f32 %v1772_v36  ;;  %v1782_v39 = vmul.f32 1.442695, %v1761_v24  ;;  %v1760_v43 = vsub.f32 %v1711_v5, %v1742_v38 }
 0x55c   : > { %v1739_v44 = vpop.xlane.xlu1 %1738 }
 0x55d   : > { %v1780_v49 = vmul.f32 1.442695, %v1760_v43  ;;  %v1759_v52 = vsub.f32 %v1710_v60, %v1739_v44  ;;  %3532 = vpow2.f32 %v1782_v39  ;;  %3232 = vmatpush3.bf16.msra.mxu1 %v3475_v19 }
 0x55e   : > { %v4216_v53 = vpop.eup %3520  ;;  %v1736_v54 = vpop.xlane.xlu0 %1735  ;;  %3288 = vmatprep.subr.msk.bf16.mxu1 %vm1925_vm6, %v3477_v6 }
 0x55f   : > { %3534 = vpow2.f32 %v1780_v49  ;;  %v1778_v22 = vmul.f32 1.442695, %v1759_v52  ;;  %v1758_v55 = vsub.f32 %v1709_v46, %v1736_v54  ;;  %v1794_v56 = vsel %vm1715_vm5, %v4216_v53, 0.0 }
 0x560   : > { %v4220_v57 = vpop.eup %3522  ;;  %1795 = vadd.xlane.f32.xlu0 %v1794_v56  ;;  %v1751_v59 = vpop.xlane.xlu1 %1750 }
 0x561   : > { %v1776_v61 = vmul.f32 1.442695, %v1758_v55  ;;  %v1763_v62 = vsub.f32 %v1714_v58, %v1751_v59  ;;  %3536 = vpow2.f32 %v1778_v22  ;;  %v1788_v1 = vsel %vm1715_vm5, %v4220_v57, 0.0 }
 0x562   : > { %v4222_v63 = vpop.eup %3524  ;;  %v1748_v0 = vpop.xlane.xlu0 %1747 }
 0x563   : > { %3538 = vpow2.f32 %v1776_v61  ;;  %v1786_v2 = vmul.f32 1.442695, %v1763_v62  ;;  %v1762_v28 = vsub.f32 %v1713_v8, %v1748_v0  ;;  %v1797_v31 = vsel %vm1715_vm5, %v4222_v63, 0.0  ;;  %v3468_v8 = vld [vmem:[#allocation4 + $0x18] sm:$0xff]  }
 0x564   : > { %v4228_v3 = vpop.eup %3526  ;;  %1789 = vadd.xlane.f32.xlu0 %v1788_v1  ;;  %1798 = vadd.xlane.f32.xlu1 %v1797_v31 }
 0x565   : > { %v1784_v4 = vmul.f32 1.442695, %v1762_v28  ;;  %3540 = vpow2.f32 %v1786_v2  ;;  %v1791_v47 = vsel %vm1715_vm5, %v4228_v3, 0.0  ;;  %3211 = vmatprep.subr.bf16.mxu0 %v3468_v8 }
 0x566   : > { %v4230_v35 = vpop.eup %3528  ;;  %3212 = vmatpush3.bf16.msra.mxu0 %v3468_v8  ;;  %v3483_v8 = vld [vmem:[#allocation4 + $0x74] sm:$0xff]  }
 0x567   : > { %3542 = vpow2.f32 %v1784_v4  ;;  %v1803_v45 = vsel %vm1715_vm5, %v4230_v35, 0.0  ;;  %3213 = vmatprep.subr.bf16.mxu0 %v3470_v40  ;;  %v3478_v4 = vld [vmem:[#allocation4 + $0x60] sm:$0xff]  }
 0x568   : > { %v4234_v5 = vpop.eup %3530  ;;  %1792 = vadd.xlane.f32.xlu1 %v1791_v47 }
 0x569   : > { %v1800_v50 = vsel %vm1715_vm5, %v4234_v5, 0.0 }
 0x56a   : > { %1801 = vadd.xlane.f32.xlu0 %v1800_v50  ;;  %v4238_v10 = vpop.eup %3532  ;;  %3214 = vmatpush3.bf16.msra.mxu0 %v3470_v40 }
 0x56b   : > { %v1815_v29 = vsel %vm1715_vm5, %v4238_v10, 0.0  ;;  %3215 = vmatprep.subr.bf16.mxu0 %v3472_v16 }
 0x56c   : > { %v4242_v23 = vpop.eup %3534  ;;  %1804 = vadd.xlane.f32.xlu1 %v1803_v45  ;;  %v3481_v45 = vld [vmem:[#allocation4 + $0x7c] sm:$0xff]  }
 0x56d   : > { %v1812_v11 = vsel %vm1715_vm5, %v4242_v23, 0.0 }
 0x56e   : > { %1813 = vadd.xlane.f32.xlu0 %v1812_v11  ;;  %v4246_v41 = vpop.eup %3536  ;;  %3216 = vmatpush3.bf16.msra.mxu0 %v3472_v16 }
 0x56f   : > { %v1809_v30 = vsel %vm1715_vm5, %v4246_v41, 0.0  ;;  %3217 = vmatprep.subr.bf16.mxu0 %v3474_v18 }
 0x570   : > { %v4250_v46 = vpop.eup %3538  ;;  %1816 = vadd.xlane.f32.xlu1 %v1815_v29 }
 0x571   : > { %v1806_v60 = vsel %vm1715_vm5, %v4250_v46, 0.0 }
 0x572   : > { %1807 = vadd.xlane.f32.xlu0 %v1806_v60  ;;  %v4256_v58 = vpop.eup %3540  ;;  %3218 = vmatpush3.bf16.msra.mxu0 %v3474_v18 }
 0x573   : > { %v1821_v51 = vsel %vm1715_vm5, %v4256_v58, 0.0  ;;  %3287 = vmatprep.subr.msk.bf16.mxu0 %vm1925_vm6, %v3476_v20 }
 0x574   : > { %v4260_v9 = vpop.eup %3542  ;;  %1810 = vadd.xlane.f32.xlu1 %v1809_v30 }
 0x575   : > { %v1818_v12 = vsel %vm1715_vm5, %v4260_v9, 0.0 }
 0x576   : > { %1819 = vadd.xlane.f32.xlu0 %v1818_v12 }
 0x578   : > { %1822 = vadd.xlane.f32.xlu1 %v1821_v51 }
 0x5e9   : > { %v1796_v26 = vpop.xlane.xlu0 %1795 }
 0x5ea   : > { %3544 = vrcp.f32 %v1796_v26 }
 0x5ed   : > { %v1790_v27 = vpop.xlane.xlu0 %1789  ;;  %v1799_v32 = vpop.xlane.xlu1 %1798 }
 0x5ee   : > { %3546 = vrcp.f32 %v1790_v27 }
 0x5ef   : > { %3548 = vrcp.f32 %v1799_v32 }
 0x5f1   : > { %v1793_v33 = vpop.xlane.xlu1 %1792 }
 0x5f2   : > { %3550 = vrcp.f32 %v1793_v33  ;;  %v3486_v33 = vld [vmem:[%s4449_s5 + $0x18] sm:$0xff]  }
 0x5f3   : > { %v1802_v34 = vpop.xlane.xlu0 %1801 }
 0x5f4   : > { %3552 = vrcp.f32 %v1802_v34  ;;  %v3487_v34 = vld [vmem:[%s4449_s5 + $0x10] sm:$0xff]  }
 0x5f5   : > { %v1805_v36 = vpop.xlane.xlu1 %1804 }
 0x5f6   : > { %3554 = vrcp.f32 %v1805_v36 }
 0x5f7   : > { %v1814_v24 = vpop.xlane.xlu0 %1813  ;;  %v3545_v43 = vpop.eup %3544 }
 0x5f8   : > { %v1838_v55 = vmul.f32 %v3545_v43, %v4216_v53 }
 0x5f9   : > { %v1817_v38 = vpop.xlane.xlu1 %1816 }
 0x5fa   : > { %v1849_v31 = vpack.c.bf16 %v1838_v55, %v1838_v55 }
 0x5fb   : > { %v1808_v39 = vpop.xlane.xlu0 %1807  ;;  %v3547_v44 = vpop.eup %3546 }
 0x5fc   : > { %3556 = vrcp.f32 %v1808_v39  ;;  %v3549_v52 = vpop.eup %3548  ;;  %v1836_v56 = vmul.f32 %v3547_v44, %v4220_v57  ;;  %v3488_v39 = vld [vmem:[%s4449_s5 + $0x8] sm:$0xff]   ;;  %v3489_v44 = vld [vmem:[%s4449_s5] sm:$0xff]  }
 0x5fd   : > { %3558 = vrcp.f32 %v1817_v38  ;;  %v1811_v49 = vpop.xlane.xlu1 %1810  ;;  %v1839_v0 = vmul.f32 %v3549_v52, %v4222_v63  ;;  %v3479_v63 = vld [vmem:[#allocation4 + $0x84] sm:$0xff]  }
 0x5fe   : > { %3560 = vrcp.f32 %v1811_v49 }
 0x5ff   : > { %v3551_v54 = vpop.eup %3550  ;;  %v1820_v22 = vpop.xlane.xlu0 %1819 }
 0x600   : > { %3562 = vrcp.f32 %v1820_v22  ;;  %v1837_v59 = vmul.f32 %v3551_v54, %v4228_v3  ;;  %v3480_v3 = vld [vmem:[#allocation4 + $0x58] sm:$0xff]  }
 0x601   : > { %v3553_v61 = vpop.eup %3552  ;;  %3564 = vrcp.f32 %v1814_v24  ;;  %v1823_v28 = vpop.xlane.xlu1 %1822 }
 0x602   : > { %v1848_v62 = vpack.c.bf16 %v1837_v59, %v1836_v56  ;;  %v1840_v1 = vmul.f32 %v3553_v61, %v4234_v5  ;;  %3566 = vrcp.f32 %v1823_v28 }
 0x603   : > { %v3555_v2 = vpop.eup %3554 }
 0x604   : > { %3219 = vmatprep.mubr.msk.bf16.mxu0 %vm1715_vm5, %v1848_v62  ;;  %v1850_v47 = vpack.c.bf16 %v1840_v1, %v1839_v0  ;;  %v1841_v53 = vmul.f32 %v3555_v2, %v4230_v35  ;;  %v3482_v35 = vld [vmem:[#allocation4 + $0x50] sm:$0xff]  }
 0x605   : > { %3220 = vmatmul.mubr.msk.bf16.vlgmr.msra.gmra.mxu0 %vm1715_vm5, %v1849_v31 }
 0x606   : > { %3238 = vmatpush3.bf16.msra.mxu0 %v2095_v21  ;;  %3233 = vmatprep.mubr.msk.bf16.mxu1 %vm1715_vm5, %v1850_v47  ;;  %v1851_v57 = vpack.c.bf16 %v1841_v53, %v1841_v53 }
 0x607   : > { %3239 = vmatprep.subr.bf16.mxu0 %v3478_v4 }
 0x608   : > { %3234 = vmatmul.mubr.msk.bf16.vlgmr.msra.gmra.mxu1 %vm1715_vm5, %v1851_v57 }
 0x609   : > { %v3557_v5 = vpop.eup %3556  ;;  %3252 = vmatpush3.bf16.msra.mxu1 %v2179_v25 }
 0x60a   : > { %v3559_v50 = vpop.eup %3558  ;;  %3240 = vmatpush3.bf16.msra.mxu0 %v3478_v4  ;;  %3253 = vmatprep.subr.bf16.mxu1 %v3479_v63  ;;  %v1842_v29 = vmul.f32 %v3557_v5, %v4250_v46 }
 0x60b   : > { %v3561_v11 = vpop.eup %3560  ;;  %3241 = vmatprep.subr.bf16.mxu0 %v3480_v3  ;;  %v1845_v48 = vmul.f32 %v3559_v50, %v4238_v10 }
 0x60c   : > { %v1843_v37 = vmul.f32 %v3561_v11, %v4246_v41  ;;  %v3485_v41 = vld [vmem:[#allocation4 + $0x6c] sm:$0xff]  }
 0x60d   : > { %v3563_v60 = vpop.eup %3562  ;;  %3254 = vmatpush3.bf16.msra.mxu1 %v3479_v63  ;;  %v1398_v11 = vld [vmem:[%s1397_s20] sm:$0xff] }
 0x60e   : > { %3242 = vmatpush3.bf16.msra.mxu0 %v3480_v3  ;;  %3255 = vmatprep.subr.bf16.mxu1 %v3481_v45  ;;  %v1852_v7 = vpack.c.bf16 %v1843_v37, %v1842_v29  ;;  %v1846_v30 = vmul.f32 %v3563_v60, %v4260_v9  ;;  %v3565_v12 = vpop.eup %3564 }
 0x60f   : > { %3243 = vmatprep.subr.bf16.mxu0 %v3482_v35  ;;  %v3567_v46 = vpop.eup %3566  ;;  %v1844_v51 = vmul.f32 %v3565_v12, %v4242_v23  ;;  %v1400_v12 = vld [vmem:[%s1397_s20 + $0x10] sm:$0xff] }
 0x610   : > { %3247 = vmatprep.mubr.msk.bf16.mxu0 %vm1715_vm5, %v1852_v7  ;;  %v1854_v13 = vpack.c.bf16 %v1846_v30, %v1845_v48  ;;  %v1847_v10 = vmul.f32 %v3567_v46, %v4256_v58  ;;  %v1399_v7 = vld [vmem:[%s1397_s20 + $0x8] sm:$0xff] }
 0x611   : > { %3256 = vmatpush3.bf16.msra.mxu1 %v3481_v45  ;;  %v1853_v9 = vpack.c.bf16 %v1844_v51, %v1844_v51  ;;  %v3029_v45 = vld [vmem:[%s4450_s6] ss:$0 sm:$0xff] }
 0x612   : > { %3244 = vmatpush3.bf16.msra.mxu0 %v3482_v35  ;;  %3261 = vmatprep.mubr.msk.bf16.mxu1 %vm1715_vm5, %v1854_v13  ;;  %v1855_v40 = vpack.c.bf16 %v1847_v10, %v1847_v10 }
 0x613   : > { %3257 = vmatprep.subr.bf16.mxu1 %v3483_v8  ;;  %3245 = vmatprep.subr.bf16.mxu0 %v3484_v15 }
 0x615   : > { %3258 = vmatpush3.bf16.msra.mxu1 %v3483_v8 }
 0x616   : > { %3246 = vmatpush3.bf16.msra.mxu0 %v3484_v15  ;;  %3259 = vmatprep.subr.bf16.mxu1 %v3485_v41 }
 0x619   : > { %3248 = vmatmul.mubr.msk.bf16.vlgmr.msra.gmra.mxu0 %vm1715_vm5, %v1853_v9  ;;  %3260 = vmatpush3.bf16.msra.mxu1 %v3485_v41 }
 0x61a   : > { %3265 = vmatprep.subr.bf16.mxu1 %v3486_v33 }
 0x61c   : > { %3262 = vmatmul.mubr.msk.bf16.vlgmr.msra.gmra.mxu1 %vm1715_vm5, %v1855_v40 }
 0x61d   : > { %3266 = vmatpush3.bf16.msra.mxu1 %v3486_v33  ;;  %v3497_v33 = vld [vmem:[%s4453_s9 + $0x24] ss:$8 sps:$4 sm:$0xff]  }
 0x61e   : > { %3267 = vmatprep.subr.bf16.mxu1 %v3487_v34 }
 0x621   : > { %3268 = vmatpush3.bf16.msra.mxu1 %v3487_v34  ;;  %v3495_v34 = vld [vmem:[%s4453_s9 + $0x20] ss:$8 sps:$4 sm:$0xff]  }
 0x622   : > { %3269 = vmatprep.subr.bf16.mxu1 %v3488_v39 }
 0x625   : > { %3270 = vmatpush3.bf16.msra.mxu1 %v3488_v39  ;;  %v3501_v39 = vld [vmem:[%s4453_s9] ss:$8 sps:$4 sm:$0xff]  }
 0x626   : > { %3271 = vmatprep.subr.bf16.mxu1 %v3489_v44 }
 0x629   : > { %3272 = vmatpush3.bf16.msra.mxu1 %v3489_v44 }
 0x6c5   : > { %v3221_v14 = vpop.f32.mrf.mxu0 }
 0x6c6   : > { %v3101_v16 = vpack.c.bf16 %v3221_v14, %v3221_v14 }
 0x6c7   : > { %v1963_v17 = vpop.f32.mrf.mxu0 }
 0x6c8   : > { %2245 = vst.msk [vmem:[#allocation5 + $0x8] sm:$0xf] %vm2242_vm7, %v3101_v16  ;;  %v3099_v18 = vpack.c.bf16 %v1963_v17, %v1963_v17  ;;  %v3235_v23 = vpop.f32.mrf.mxu1 }
 0x6c9   : > { %v3104_v19 = vpack.c.bf16 %v3235_v23, %v3235_v23  ;;  %v3222_v20 = vpop.f32.mrf.mxu0 }
 0x6ca   : > { %2243 = vst.msk [vmem:[#allocation5] sm:$0xf] %vm2242_vm7, %v3099_v18  ;;  %v2047_v58 = vpop.f32.mrf.mxu1 }
 0x6cb   : > { %v3102_v21 = vpack.c.bf16 %v2047_v58, %v2047_v58  ;;  %v1966_v6 = vpop.f32.mrf.mxu0  ;;  %2260 = vrot.lane.b32.xlu1 %v3104_v19, %s3638_s17 }
 0x6cc   : > { %v3100_v25 = vpack.c.bf16 %v1966_v6, %v1966_v6  ;;  %v3236_v26 = vpop.f32.mrf.mxu1 }
 0x6cd   : > { %2256 = vrot.lane.b32.xlu0 %v3102_v21, %s3638_s17 }
 0x6ce   : > { %2244 = vst.msk [vmem:[#allocation5 + $0x4] sm:$0xf] %vm2242_vm7, %v3100_v25  ;;  %v2050_v27 = vpop.f32.mrf.mxu1 }
 0x6cf   : > { %v3103_v32 = vpack.c.bf16 %v2050_v27, %v2050_v27  ;;  %v3494_v27 = vld [vmem:[%s4453_s9 + $0x34] ss:$8 sps:$4 sm:$0xff]  }
 0x6d0   : > { %2559 = vmatprep.subr.bf16.mxu1 %v3494_v27 }
 0x6d1   : > { %2258 = vrot.lane.b32.xlu1 %v3103_v32, %s3638_s17  ;;  %v3492_v32 = vld [vmem:[%s4453_s9 + $0x30] ss:$8 sps:$4 sm:$0xff]  }
 0x6d9   : > { %v3249_v36 = vpop.f32.mrf.mxu0 }
 0x6da   : > { %v3107_v24 = vpack.c.bf16 %v3249_v36, %v3249_v36  ;;  %v3500_v36 = vld [vmem:[%s4453_s9 + $0x14] ss:$8 sps:$4 sm:$0xff]  }
 0x6db   : > { %v2131_v38 = vpop.f32.mrf.mxu0 }
 0x6dc   : > { %2283 = vrot.lane.b32.xlu1 %v3107_v24, %s3639_s15  ;;  %v3263_v43 = vpop.f32.mrf.mxu1  ;;  %v3105_v52 = vpack.c.bf16 %v2131_v38, %v2131_v38  ;;  %v3498_v24 = vld [vmem:[%s4453_s9 + $0x10] ss:$8 sps:$4 sm:$0xff]   ;;  %v3503_v38 = vld [vmem:[%s4453_s9 + $0x4] ss:$8 sps:$4 sm:$0xff]  }
 0x6dd   : > { %v3250_v49 = vpop.f32.mrf.mxu0  ;;  %v3110_v0 = vpack.c.bf16 %v3263_v43, %v3263_v43  ;;  %v3641_v43 = vmov 0  }
 0x6de   : > { %v2215_v54 = vpop.f32.mrf.mxu1 }
 0x6df   : > { %v3108_v22 = vpack.c.bf16 %v2215_v54, %v2215_v54  ;;  %v2134_v55 = vpop.f32.mrf.mxu0 }
 0x6e0   : > { %2279 = vrot.lane.b32.xlu1 %v3105_v52, %s3639_s15  ;;  %v3264_v56 = vpop.f32.mrf.mxu1  ;;  %v3106_v61 = vpack.c.bf16 %v2134_v55, %v2134_v55 }
 0x6e1   : > { %2302 = vrot.lane.b32.xlu0 %v3108_v22, %s3640_s18 }
 0x6e2   : > { %v2218_v59 = vpop.f32.mrf.mxu1 }
 0x6e3   : > { %v3109_v62 = vpack.c.bf16 %v2218_v59, %v2218_v59 }
 0x6e5   : > { %2281 = vrot.lane.b32.xlu0 %v3106_v61, %s3639_s15  ;;  %2304 = vrot.lane.b32.xlu1 %v3109_v62, %s3640_s18 }
 0x6e9   : > { %2306 = vrot.lane.b32.xlu0 %v3110_v0, %s3640_s18 }
 0x73d   : > { %v2261_v1 = vpop.permute.xlu1 %2260 }
 0x73e   : > { %2268 = vst.msk [vmem:[#allocation5 + $0x8] sm:$0xf] %vm2265_vm8, %v2261_v1  ;;  %v3038_v1 = vld [vmem:[%s4451_s7] ss:$0 sm:$0xff] }
 0x73f   : > { %v2257_v2 = vpop.permute.xlu0 %2256 }
 0x740   : > { %2266 = vst.msk [vmem:[#allocation5] sm:$0xf] %vm2265_vm8, %v2257_v2 }
 0x743   : > { %v2259_v28 = vpop.permute.xlu1 %2258 }
 0x744   : > { %2267 = vst.msk [vmem:[#allocation5 + $0x4] sm:$0xf] %vm2265_vm8, %v2259_v28 }
 0x74e   : > { %v2284_v31 = vpop.permute.xlu1 %2283 }
 0x74f   : > { %2291 = vst.msk [vmem:[#allocation5 + $0x8] sm:$0xf] %vm2288_vm9, %v2284_v31 }
 0x752   : > { %v2280_v4 = vpop.permute.xlu1 %2279 }
 0x753   : > { %2289 = vst.msk [vmem:[#allocation5] sm:$0xf] %vm2288_vm9, %v2280_v4  ;;  %v2303_v47 = vpop.permute.xlu0 %2302  ;;  %v3039_v4 = vld [vmem:[%s4452_s8] ss:$0 sm:$0xff] }
 0x754   : > { %2312 = vst.msk [vmem:[#allocation5] sm:$0xf] %vm2311_vm10, %v2303_v47 }
 0x757   : > { %v2282_v53 = vpop.permute.xlu0 %2281  ;;  %v2305_v57 = vpop.permute.xlu1 %2304 }
 0x758   : > { %2290 = vst.msk [vmem:[#allocation5 + $0x4] sm:$0xf] %vm2288_vm9, %v2282_v53 }
 0x759   : > { %2313 = vst.msk [vmem:[#allocation5 + $0x4] sm:$0xf] %vm2311_vm10, %v2305_v57 }
 0x75b   : > { %v2307_v63 = vpop.permute.xlu0 %2306 }
 0x75c   : > { %2314 = vst.msk [vmem:[#allocation5 + $0x8] sm:$0xf] %vm2311_vm10, %v2307_v63 }
 0x760   : > { %v3490_v3 = vld [vmem:[#allocation5] sm:$0xff]  }
 0x761   : > { %3273 = vmatprep.mubr.msk.bf16.mxu1 %vm2365_vm11, %v3490_v3 }
 0x763   : > { %v3491_v5 = vld [vmem:[#allocation5 + $0x8] ss:$0 sps:$4 sm:$0xff]  }
 0x764   : > { %3274 = vmatmul.mubr.msk.bf16.vlgmr.msra.gmra.mxu1 %vm2365_vm11, %v3491_v5 }
 0x765   : > { %2560 = vmatpush1.bf16.msra.mxu1 %v3492_v32  ;;  %2583 = vmatprep.mubr.bf16.mxu1 %v3641_v43 }
 0x766   : > { %2561 = vmatprep.subr.bf16.mxu1 %v3497_v33 }
 0x769   : > { %2562 = vmatpush1.bf16.msra.mxu1 %v3495_v34 }
 0x76a   : > { %2563 = vmatprep.subr.bf16.mxu1 %v3500_v36 }
 0x76d   : > { %2564 = vmatpush1.bf16.msra.mxu1 %v3498_v24 }
 0x76e   : > { %2565 = vmatprep.subr.bf16.mxu1 %v3503_v38 }
 0x771   : > { %2566 = vmatpush1.bf16.msra.mxu1 %v3501_v39 }
 0x824   : > { %v3275_v50 = vpop.f32.mrf.mxu1 }
 0x825   : > { %v2415_v30 = vadd.f32 %v3275_v50, %v3029_v45 }
 0x826   : > { %v2406_v35 = vpop.f32.mrf.mxu1 }
 0x827   : > { %v2407_v29 = vadd.f32 %v3029_v45, %v2406_v35  ;;  %v4321_v41 = vadd.f32 %v2415_v30, %v1400_v12  ;;  %v3504_v35 = vld [vmem:[%s4455_s11 + $0x78] sm:$0xff]   ;;  %v3509_v30 = vld [vmem:[%s4455_s11 + $0x28] sm:$0xff]  }
 0x828   : > { %v3276_v37 = vpop.f32.mrf.mxu1  ;;  %3157 = vmatprep.subr.bf16.mxu0 %v3504_v35  ;;  %v3512_v12 = vld [vmem:[%s4455_s11 + $0x58] sm:$0xff]  }
 0x829   : > { %v4315_v60 = vadd.f32 %v2407_v29, %v1398_v11  ;;  %v2431_v51 = vsel %vm2365_vm11, %v4321_v41, 0.0  ;;  %v3505_v29 = vld [vmem:[%s4455_s11 + $0x38] sm:$0xff]   ;;  %v3506_v37 = vld [vmem:[%s4455_s11 + $0x70] sm:$0xff]  }
 0x82a   : > { %v2409_v48 = vpop.f32.mrf.mxu1  ;;  %3158 = vmatpush3.bf16.msra.mxu0 %v3505_v29 }
 0x82b   : > { %v2410_v8 = vadd.f32 %v3029_v45, %v2409_v48  ;;  %v2425_v15 = vsel %vm2365_vm11, %v4315_v60, 0.0  ;;  %3159 = vmatprep.subr.bf16.mxu0 %v3506_v37  ;;  %v3508_v48 = vld [vmem:[%s4455_s11 + $0x68] sm:$0xff]  }
 0x82c   : > { %2426 = vadd.xlane.f32.xlu1 %v2425_v15  ;;  %v3511_v15 = vld [vmem:[%s4455_s11 + $0x20] sm:$0xff]  }
 0x82d   : > { %v4319_v13 = vadd.f32 %v2410_v8, %v1399_v7  ;;  %v3507_v7 = vld [vmem:[%s4455_s11 + $0x30] sm:$0xff]   ;;  %v3510_v8 = vld [vmem:[%s4455_s11 + $0x60] sm:$0xff]  }
 0x82e   : > { %3160 = vmatpush3.bf16.msra.mxu0 %v3507_v7 }
 0x82f   : > { %v2428_v46 = vsel %vm2365_vm11, %v4319_v13, 0.0  ;;  %3161 = vmatprep.subr.bf16.mxu0 %v3508_v48 }
 0x830   : > { %2429 = vadd.xlane.f32.xlu0 %v2428_v46  ;;  %v3513_v46 = vld [vmem:[%s4455_s11 + $0x18] sm:$0xff]  }
 0x832   : > { %3162 = vmatpush3.bf16.msra.mxu0 %v3509_v30 }
 0x833   : > { %3163 = vmatprep.subr.bf16.mxu0 %v3510_v8 }
 0x834   : > { %2432 = vadd.xlane.f32.xlu0 %v2431_v51  ;;  %v3514_v51 = vld [vmem:[%s4455_s11 + $0x50] sm:$0xff]  }
 0x836   : > { %3164 = vmatpush3.bf16.msra.mxu0 %v3511_v15 }
 0x837   : > { %3165 = vmatprep.subr.bf16.mxu0 %v3512_v12  ;;  %v3054_v12 = vld [vmem:[%s4456_s12] ss:$0 sm:$0xff] }
 0x83a   : > { %3166 = vmatpush3.bf16.msra.mxu0 %v3513_v46 }
 0x83b   : > { %3167 = vmatprep.subr.bf16.mxu0 %v3514_v51 }
 0x8b5   : > { %v2427_v10 = vpop.xlane.xlu1 %2426 }
 0x8b6   : > { %v2435_v9 = vmul.f32 0.015625, %v2427_v10  ;;  %v3515_v10 = vld [vmem:[%s4455_s11 + $0x10] sm:$0xff]  }
 0x8b7   : > { %3168 = vmatpush3.bf16.msra.mxu0 %v3515_v10 }
 0x8b8   : > { %v2438_v40 = vsub.f32 %v4315_v60, %v2435_v9  ;;  %v3516_v9 = vld [vmem:[%s4455_s11 + $0x48] sm:$0xff]  }
 0x8b9   : > { %v2430_v14 = vpop.xlane.xlu0 %2429  ;;  %3169 = vmatprep.subr.bf16.mxu0 %v3516_v9 }
 0x8ba   : > { %v2436_v16 = vmul.f32 0.015625, %v2430_v14  ;;  %v2441_v17 = vmul.f32 %v2438_v40, %v2438_v40  ;;  %v3518_v14 = vld [vmem:[%s4455_s11 + $0x40] sm:$0xff]  }
 0x8bc   : > { %v2439_v18 = vsub.f32 %v4319_v13, %v2436_v16  ;;  %v2444_v23 = vsel %vm2365_vm11, %v2441_v17, 0.0  ;;  %v3519_v16 = vld [vmem:[%s4455_s11] sm:$0xff]   ;;  %v2496_v17 = vshrl.u32 %v1698_v42, 7 }
 0x8bd   : > { %v2433_v19 = vpop.xlane.xlu0 %2432  ;;  %2445 = vadd.xlane.f32.xlu0 %v2444_v23  ;;  %v2493_v23 = vld [vmem:[%s4454_s10] sm:$0x3] }
 0x8be   : > { %v2437_v20 = vmul.f32 0.015625, %v2433_v19  ;;  %v2442_v58 = vmul.f32 %v2439_v18, %v2439_v18  ;;  %v2501_v19 = vsub.s32 1, %v2496_v17 }
 0x8c0   : > { %v2440_v21 = vsub.f32 %v4321_v41, %v2437_v20  ;;  %v2447_v6 = vsel %vm2365_vm11, %v2442_v58, 0.0 }
 0x8c1   : > { %2448 = vadd.xlane.f32.xlu1 %v2447_v6  ;;  %v2502_v6 = vrot.slane %v2493_v23, %v2501_v19 }
 0x8c2   : > { %v2443_v25 = vmul.f32 %v2440_v21, %v2440_v21 }
 0x8c4   : > { %v2450_v26 = vsel %vm2365_vm11, %v2443_v25, 0.0 }
 0x8c5   : > { %2451 = vadd.xlane.f32.xlu0 %v2450_v26 }
 0x946   : > { %v2446_v44 = vpop.xlane.xlu0 %2445 }
 0x947   : > { %v2453_v49 = vmul.f32 0.015625, %v2446_v44 }
 0x949   : > { %v2456_v52 = vadd.f32 1e-05, %v2453_v49 }
 0x94a   : > { %v2449_v54 = vpop.xlane.xlu1 %2448 }
 0x94b   : > { %3568 = vrsqrt.f32 %v2456_v52  ;;  %v2454_v22 = vmul.f32 0.015625, %v2449_v54 }
 0x94d   : > { %v2457_v55 = vadd.f32 1e-05, %v2454_v22 }
 0x94e   : > { %v2452_v56 = vpop.xlane.xlu0 %2451 }
 0x94f   : > { %3570 = vrsqrt.f32 %v2457_v55  ;;  %v2455_v59 = vmul.f32 0.015625, %v2452_v56 }
 0x951   : > { %v2458_v61 = vadd.f32 1e-05, %v2455_v59 }
 0x953   : > { %3572 = vrsqrt.f32 %v2458_v61 }
 0x958   : > { %v3569_v62 = vpop.eup %3568 }
 0x959   : > { %v2462_v0 = vmul.f32 %v3569_v62, %v2438_v40  ;;  %v3517_v40 = vld [vmem:[%s4455_s11 + $0x8] sm:$0xff]  }
 0x95a   : > { %3170 = vmatpush3.bf16.msra.mxu0 %v3517_v40 }
 0x95b   : > { %v2471_v31 = vmul.f32 %v3038_v1, %v2462_v0  ;;  %3171 = vmatprep.subr.bf16.mxu0 %v3518_v14 }
 0x95c   : > { %v3571_v2 = vpop.eup %3570 }
 0x95d   : > { %v2463_v28 = vmul.f32 %v3571_v2, %v2439_v18  ;;  %v2480_v57 = vadd.f32 %v3039_v4, %v2471_v31  ;;  %v2497_v18 = vsub.s32 0, %v2496_v17 }
 0x95e   : > { %3172 = vmatpush3.bf16.msra.mxu0 %v3519_v16 }
 0x95f   : > { %v2472_v47 = vmul.f32 %v3038_v1, %v2463_v28  ;;  %v2498_v58 = vrot.slane %v2493_v23, %v2497_v18 }
 0x960   : > { %v3573_v53 = vpop.eup %3572 }
 0x961   : > { %v2481_v63 = vadd.f32 %v3039_v4, %v2472_v47  ;;  %v2464_v3 = vmul.f32 %v3573_v53, %v2440_v21 }
 0x963   : > { %v2483_v5 = vpack.c.bf16 %v2481_v63, %v2480_v57  ;;  %v2473_v50 = vmul.f32 %v3038_v1, %v2464_v3 }
 0x965   : > { %3048 = vmatmul.mubr.msk.bf16.vlgmr.msra.gmra.mxu1 %vm2365_vm11, %v2483_v5  ;;  %v2482_v45 = vadd.f32 %v3039_v4, %v2473_v50 }
 0x966   : > { %2593 = vmatprep.mubr.bf16.mxu1 %v3641_v43 }
 0x967   : > { %v2484_v11 = vpack.c.bf16 %v2482_v45, %v2482_v45 }
 0x96d   : > { %3049 = vmatmul.mubr.msk.bf16.gmra.mxu1 %vm2365_vm11, %v2484_v11 }
 0xa25   : > { %v2585_v20 = vpop.f32.mrf.mxu1 }
 0xa26   : > { %v2586_v26 = vadd.f32 %v2585_v20, %v2498_v58 }
 0xa27   : > { %v2587_v21 = vpop.f32.mrf.mxu1 }
 0xa28   : > { %v2588_v33 = vadd.f32 %v2587_v21, %v2502_v6 }
 0xa29   : > { %v2589_v25 = vpop.f32.mrf.mxu1 }
 0xa2a   : > { %v2590_v27 = vadd.f32 %v2589_v25, %v2498_v58 }
 0xa2b   : > { %v2591_v32 = vpop.f32.mrf.mxu1 }
 0xa2c   : > { %v2602_v34 = vpack.c.bf16 %v2590_v27, %v2586_v26  ;;  %v2592_v36 = vadd.f32 %v2591_v32, %v2502_v6 }
 0xa2d   : > { %v2595_v24 = vpop.f32.mrf.mxu1 }
 0xa2e   : > { %v3050_v38 = vmul.bf16 3218784218, %v2602_v34  ;;  %v2603_v42 = vpack.c.bf16 %v2592_v36, %v2588_v33  ;;  %v2596_v39 = vadd.f32 %v2595_v24, %v2498_v58 }
 0xa2f   : > { %v2597_v43 = vpop.f32.mrf.mxu1 }
 0xa30   : > { %v2615_v44 = vmul.bf16 1069105081, %v3050_v38  ;;  %v3051_v49 = vmul.bf16 3218784218, %v2603_v42  ;;  %v2604_v52 = vpack.c.bf16 %v2596_v39, %v2596_v39  ;;  %v2598_v54 = vadd.f32 %v2597_v43, %v2502_v6 }
 0xa31   : > { %v2599_v22 = vpop.f32.mrf.mxu1 }
 0xa32   : > { %3574 = vpow.bf16 %v2615_v44  ;;  %v2618_v55 = vmul.bf16 1069105081, %v3051_v49  ;;  %v3052_v56 = vmul.bf16 3218784218, %v2604_v52  ;;  %v2605_v59 = vpack.c.bf16 %v2598_v54, %v2598_v54 }
 0xa33   : > { %v2600_v61 = vpop.f32.mrf.mxu1 }
 0xa34   : > { %3576 = vpow.bf16 %v2618_v55  ;;  %v2621_v62 = vmul.bf16 1069105081, %v3052_v56  ;;  %v3053_v0 = vmul.bf16 3218784218, %v2605_v59 }
 0xa36   : > { %3578 = vpow.bf16 %v2621_v62  ;;  %v2624_v1 = vmul.bf16 1069105081, %v3053_v0 }
 0xa38   : > { %3580 = vpow.bf16 %v2624_v1 }
 0xa40   : > { %v3575_v2 = vpop.eup %3574 }
 0xa41   : > { %v2626_v28 = vadd.bf16 1065369472, %v3575_v2 }
 0xa42   : > { %v3577_v31 = vpop.eup %3576 }
 0xa43   : > { %3582 = vrcp.bf16 %v2626_v28  ;;  %v2627_v4 = vadd.bf16 1065369472, %v3577_v31 }
 0xa44   : > { %v3579_v47 = vpop.eup %3578 }
 0xa45   : > { %3584 = vrcp.bf16 %v2627_v4  ;;  %v2628_v57 = vadd.bf16 1065369472, %v3579_v47 }
 0xa46   : > { %v3581_v53 = vpop.eup %3580 }
 0xa47   : > { %v2629_v63 = vadd.bf16 1065369472, %v3581_v53 }
 0xa49   : > { %3586 = vrcp.bf16 %v2629_v63 }
 0xa4a   : > { %3588 = vrcp.bf16 %v2628_v57 }
 0xa51   : > { %v3583_v3 = vpop.eup %3582 }
 0xa52   : > { %v2631_v50 = vmul.bf16 1065369472, %v3583_v3 }
 0xa53   : > { %v3585_v5 = vpop.eup %3584 }
 0xa54   : > { %v2633_v45 = vmul.bf16 1065369472, %v3585_v5  ;;  %v2638_v29 = vmul.bf16 %v2631_v50, %v2602_v34 }
 0xa56   : > { %v2639_v11 = vmul.bf16 %v2633_v45, %v2603_v42 }
 0xa57   : > { %v3587_v35 = vpop.eup %3586 }
 0xa58   : > { %v3589_v37 = vpop.eup %3588  ;;  %v2637_v7 = vmul.bf16 1065369472, %v3587_v35  ;;  %2809 = vmatprep.mubr.bf16.mxu0 %v2639_v11 }
 0xa59   : > { %2810 = vmatmul.mubr.bf16.vlgmr.msra.gmra.mxu0 %v2638_v29  ;;  %v2635_v30 = vmul.bf16 1065369472, %v3589_v37 }
 0xa5a   : > { %v2641_v48 = vmul.bf16 %v2637_v7, %v2605_v59 }
 0xa5b   : > { %v2640_v8 = vmul.bf16 %v2635_v30, %v2604_v52 }
 0xa5c   : > { %2817 = vmatprep.mubr.bf16.mxu0 %v2641_v48 }
 0xa61   : > { %2818 = vmatmul.mubr.bf16.gmra.mxu0 %v2640_v8 }
 0xb19   : > { %v3173_v15 = vpop.f32.mrf.mxu0 }
 0xb1b   : > { %v3174_v46 = vpop.f32.mrf.mxu0 }
 0xb1c   : > { %v3175_v51 = vadd.f32 %v3174_v46, %v3173_v15 }
 0xb1d   : > { %v3176_v10 = vpop.f32.mrf.mxu0 }
 0xb1e   : > { %v2812_v9 = vadd.f32 %v3175_v51, %v3054_v12 }
 0xb1f   : > { %v3177_v40 = vpop.f32.mrf.mxu0 }
 0xb20   : > { %v2825_v14 = vadd.f32 %v2812_v9, %v4315_v60  ;;  %v3178_v16 = vadd.f32 %v3177_v40, %v3176_v10 }
 0xb21   : > { %v3179_v17 = vpop.f32.mrf.mxu0 }
 0xb22   : > { %2828 = vst.msk [vmem:[%s3753_s14] sm:$0xff] %vm2365_vm11, %v2825_v14  ;;  %v2815_v18 = vadd.f32 %v3178_v16, %v3054_v12 }
 0xb23   : > { %v3180_v23 = vpop.f32.mrf.mxu0 }
 0xb24   : > { %v2826_v19 = vadd.f32 %v2815_v18, %v4319_v13  ;;  %v3181_v20 = vadd.f32 %v3180_v23, %v3179_v17 }
 0xb25   : > { %v3182_v58 = vpop.f32.mrf.mxu0 }
 0xb26   : > { %2829 = vst.msk [vmem:[%s3753_s14 + $0x8] sm:$0xff] %vm2365_vm11, %v2826_v19  ;;  %v2820_v21 = vadd.f32 %v3181_v20, %v3054_v12 }
 0xb27   : > { %v3183_v6 = vpop.f32.mrf.mxu0 }
 0xb28   : > { %v2827_v25 = vadd.f32 %v2820_v21, %v4321_v41 }
 0xb2a   : > { %2830 = vst.msk [vmem:[%s3753_s14 + $0x10] sm:$0xff] %vm2365_vm11, %v2827_v25 }
 0xb2b PF: > { %s23_s29 = sadd.s32 1, %s3628_s29   ;;  %s4459_s18 = sld [smem:[#allocation6_spill]] }
 0xb2c   : > { %p20_p8 = scmp.ge.s32.totalorder %s23_s29, 8   ;;  %s4460_s25 = smov %s3620_s27 }
 0xb2d   : > { %s4461_s26 = smov %s3624_s28  ;;  %s4462_s27 = smov %s4465_s30 }
 0xb2e   :  { %22 = sbr.rel (!%p20_p8) target bundleno = 3 (0x3), region = 117 }
 0xb31   : > { %s4463_s28 = smov %s4459_s18 }

</bundles_post_ra>
